<compile_context>
chip_gen: v5e
topology: v5e:2x2
jax: 0.10.0
libtpu: 0.0.40
codegen_flags: <defaults>
</compile_context>

<pallas_src>
import functools
import math

import numpy as np
import jax
import jax.numpy as jnp
from jax.experimental import pallas as pl
from jax.experimental.pallas import tpu as pltpu


# ---------------- python_speech_features.logfbank defaults ------------------
SAMPLERATE = 16000
WINLEN = 0.025          # 400 samples
WINSTEP = 0.01          # 160 samples
NFILT = 26
NFFT = 512
PREEMPH = 0.97
LOG_EPS = float(np.finfo(np.float64).eps)   # logfbank clamps zeros to eps
LN_EPS = 1e-5                                # torch F.layer_norm default

_NFREQ = NFFT // 2 + 1     # 257 rfft bins (reference only)
_NFREQ_K = 256             # bins actually computed; Nyquist bin 256 has zero mel weight
_NFILT_PAD = 128           # filter axis padded to 128 lanes (lane-dense stores)
_FRAME_LEN = int(round(WINLEN * SAMPLERATE))    # 400
_FRAME_STEP = int(round(WINSTEP * SAMPLERATE))  # 160


def _round_up(x, m):
    return ((x + m - 1) // m) * m


# ------------------------- filterbank / DFT matrices ------------------------
def _hz2mel(hz):
    return 2595.0 * np.log10(1.0 + hz / 700.0)


def _mel2hz(mel):
    return 700.0 * (10.0 ** (mel / 2595.0) - 1.0)


def _mel_filterbank(nfilt=NFILT, nfft=NFFT, samplerate=SAMPLERATE,
                    lowfreq=0.0, highfreq=None):
    highfreq = highfreq or samplerate / 2.0
    lowmel, highmel = _hz2mel(lowfreq), _hz2mel(highfreq)
    melpoints = np.linspace(lowmel, highmel, nfilt + 2)
    bins = np.floor((nfft + 1) * _mel2hz(melpoints) / samplerate).astype(np.int64)
    fbank = np.zeros((nfilt, nfft // 2 + 1), dtype=np.float64)
    for j in range(nfilt):
        for i in range(int(bins[j]), int(bins[j + 1])):
            fbank[j, i] = (i - bins[j]) / (bins[j + 1] - bins[j])
        for i in range(int(bins[j + 1]), int(bins[j + 2])):
            fbank[j, i] = (bins[j + 2] - i) / (bins[j + 2] - bins[j + 1])
    return fbank


def _build_dft_mel_mats():
    """Combined [cos | sin] DFT matrix (NFFT, 2*256) and mel^T / NFFT (256, 128).

    Bin 256 (Nyquist) is dropped: the last mel triangle ends at bin 255, so the
    output is bit-identical while the DFT matmul N shrinks 257->256.
    The 1/NFFT power-spectrum scale is folded into the mel matrix.
    """
    n = np.arange(NFFT)[:, None].astype(np.float64)
    k = np.arange(_NFREQ_K)[None, :].astype(np.float64)
    ang = 2.0 * np.pi * n * k / NFFT
    dft = np.concatenate([np.cos(ang), np.sin(ang)], axis=1).astype(np.float32)  # (512, 512)
    mel = _mel_filterbank()                                                       # (26, 257)
    mel_t = np.zeros((_NFREQ_K, _NFILT_PAD), dtype=np.float32)
    mel_t[:, :NFILT] = (mel[:, :_NFREQ_K].T / float(NFFT)).astype(np.float32)
    return jnp.asarray(dft), jnp.asarray(mel_t)


# ------------------------------ host-side glue -------------------------------
def _num_frames(slen):
    if slen <= _FRAME_LEN:
        return 1
    return 1 + int(math.ceil((slen - _FRAME_LEN) / _FRAME_STEP))


def _pick_time_tiling(numframes, frame_tile, stack_order):
    """Pick (frame_tile, padded_T, n_tiles) with < 8*stack_order pad per tile."""
    granule = 8 * stack_order                      # q = ft/stack_order stays 8-aligned
    n_tiles = max(1, -(-numframes // frame_tile))
    if n_tiles == 1 and numframes >= 256:
        n_tiles = 2                                # >=2 grid steps -> v7x megacore can split
    ft = _round_up(-(-numframes // n_tiles), granule)
    return ft, n_tiles * ft, n_tiles


# --------------------------------- kernel ------------------------------------
def _fused_fbank_stack_ln_kernel(frames_ref, dft_ref, mel_ref, o_ref, *,
                                 numframes, stack_order):
    """log-mel fbank + stacker + layer norm for one deinterleaved frame tile.

    The host permutes frame rows so quarter k of the tile holds frames
    (tile*ft + stack_order*j + k); group-of-stack_order statistics are then
    plain aligned slices + adds, and the output row j is the stacked,
    layer-normed group j laid out as stack_order lane-dense 128-wide segments.
    """
    ft = frames_ref.shape[0]
    q = ft // stack_order
    tile = pl.program_id(0)

    # ---- log-mel filterbank: DFT-as-matmul on the MXU ----
    f = frames_ref[...]                                                   # (ft, 512)
    dft = jnp.dot(f, dft_ref[...], preferred_element_type=jnp.float32)    # (ft, 512)
    re = dft[:, :_NFREQ_K]
    im = dft[:, _NFREQ_K:]
    pspec = re * re + im * im                                             # 1/NFFT folded into mel
    fb = jnp.dot(pspec, mel_ref[...], preferred_element_type=jnp.float32)  # (ft, 128)
    logfb = jnp.log(jnp.where(fb <= 0.0, LOG_EPS, fb))

    # ---- fused stacker + layer norm over groups of `stack_order` frames ----
    lane = jax.lax.broadcasted_iota(jnp.int32, (q, _NFILT_PAD), 1)
    grp = jax.lax.broadcasted_iota(jnp.int32, (q, _NFILT_PAD), 0)
    lane_ok = lane < NFILT

    xs = []
    for k in range(stack_order):
        xk = logfb[k * q:(k + 1) * q, :]                 # aligned sublane slice
        frame_idx = tile * ft + stack_order * grp + k    # original frame index
        # Frames past the end of the utterance behave like the stacker's zero
        # padding; padded lanes (>=26) are excluded from the statistics.
        xs.append(jnp.where(lane_ok & (frame_idx < numframes), xk, 0.0))

    inv_d = 1.0 / float(stack_order * NFILT)             # 1/104
    gsum = xs[0]
    for xk in xs[1:]:
        gsum = gsum + xk
    mean = jnp.sum(gsum, axis=-1, keepdims=True) * inv_d          # (q, 1)

    diffs = []
    ss = jnp.zeros((q, 1), jnp.float32)
    for xk in xs:
        dk = jnp.where(lane_ok, xk - mean, 0.0)
        diffs.append(dk)
        ss = ss + jnp.sum(dk * dk, axis=-1, keepdims=True)
    inv_std = jax.lax.rsqrt(ss * inv_d + LN_EPS)                   # (q, 1)

    # One unmasked, lane-dense (q, stack_order*128) store.
    o_ref[...] = jnp.concatenate([dk * inv_std for dk in diffs], axis=-1)


# --------------------------------- wrapper ------------------------------------
def fbanks_and_stack(x, *, stack_order=4, frame_tile=512):
    """Pallas implementation of FBanksAndStack.forward (returns (T', 4*26) f32)."""
    # ---- preemphasis (host glue) ----
    sig = jnp.asarray(x, jnp.float32).reshape(-1)                  # == x.squeeze()
    sig = jnp.concatenate([sig[:1], sig[1:] - PREEMPH * sig[:-1]])
    slen = int(sig.shape[0])
    numframes = _num_frames(slen)

    ft, t_pad, n_tiles = _pick_time_tiling(numframes, frame_tile, stack_order)
    q = ft // stack_order

    # Zero-pad so every (possibly padding) frame reads in-bounds.
    padlen = (t_pad - 1) * _FRAME_STEP + _FRAME_LEN
    sig = jnp.pad(sig, (0, padlen - slen))

    # Framing gather with group-deinterleaved row order: permuted row
    # (tile*ft + k*q + j) holds original frame (tile*ft + stack_order*j + k).
    # TODO(synk): framing is a strided gather done in JAX glue, not in-kernel.
    rows = np.arange(t_pad)
    tile_i, r = rows // ft, rows % ft
    k_slot, j_grp = r // q, r % q
    orig_frame = tile_i * ft + stack_order * j_grp + k_slot
    idx = orig_frame[:, None] * _FRAME_STEP + np.arange(_FRAME_LEN)[None, :]
    frames = sig[idx]                                               # (t_pad, 400)
    frames = jnp.pad(frames, ((0, 0), (0, NFFT - _FRAME_LEN)))      # (t_pad, 512)

    dft_m, mel_m = _build_dft_mel_mats()

    kernel = functools.partial(_fused_fbank_stack_ln_kernel,
                               numframes=numframes, stack_order=stack_order)
    out = pl.pallas_call(
        kernel,
        out_shape=jax.ShapeDtypeStruct(
            (t_pad // stack_order, stack_order * _NFILT_PAD), jnp.float32),
        grid_spec=pltpu.PrefetchScalarGridSpec(
            num_scalar_prefetch=0,
            grid=(n_tiles,),
            in_specs=[
                pl.BlockSpec((ft, NFFT), lambda i: (i, 0)),
                pl.BlockSpec((NFFT, 2 * _NFREQ_K), lambda i: (0, 0)),
                pl.BlockSpec((_NFREQ_K, _NFILT_PAD), lambda i: (0, 0)),
            ],
            out_specs=pl.BlockSpec((q, stack_order * _NFILT_PAD), lambda i: (i, 0)),
        ),
        compiler_params=pltpu.CompilerParams(
            dimension_semantics=("parallel",)),
    )(frames, dft_m, mel_m)

    # Undo the 128-lane padding of each stacked segment: one reshape + slice.
    t2 = -(-numframes // stack_order)
    out = out.reshape(t_pad // stack_order, stack_order, _NFILT_PAD)[:t2, :, :NFILT]
    return out.reshape(t2, stack_order * NFILT)


# --------------------------- pure-JAX reference -------------------------------
def _reference(x, *, stack_order=4):
    sig = jnp.asarray(x, jnp.float32).reshape(-1)
    sig = jnp.concatenate([sig[:1], sig[1:] - PREEMPH * sig[:-1]])
    slen = int(sig.shape[0])
    numframes = _num_frames(slen)
    padlen = (numframes - 1) * _FRAME_STEP + _FRAME_LEN
    sig = jnp.pad(sig, (0, padlen - slen))
    idx = (np.arange(numframes)[:, None] * _FRAME_STEP
           + np.arange(_FRAME_LEN)[None, :])
    frames = sig[idx]                                               # (T, 400)

    n = np.arange(_FRAME_LEN)[:, None].astype(np.float64)
    kk = np.arange(_NFREQ)[None, :].astype(np.float64)
    ang = 2.0 * np.pi * n * kk / NFFT
    cos_m = jnp.asarray(np.cos(ang), jnp.float32)
    sin_m = jnp.asarray(np.sin(ang), jnp.float32)
    prec = jax.lax.Precision.HIGHEST
    re = jnp.matmul(frames, cos_m, precision=prec)
    im = jnp.matmul(frames, sin_m, precision=prec)
    pspec = (re * re + im * im) / NFFT
    mel = jnp.asarray(_mel_filterbank(), jnp.float32)               # (26, 257)
    fb = jnp.matmul(pspec, mel.T, precision=prec)
    fb = jnp.where(fb <= 0.0, LOG_EPS, fb)
    logfb = jnp.log(fb)

    t2 = -(-numframes // stack_order)
    logfb = jnp.pad(logfb, ((0, t2 * stack_order - numframes), (0, 0)))
    stacked = logfb.reshape(t2, stack_order * NFILT)
    mean = stacked.mean(axis=-1, keepdims=True)
    var = ((stacked - mean) ** 2).mean(axis=-1, keepdims=True)
    return (stacked - mean) * jax.lax.rsqrt(var + LN_EPS)


if __name__ == "__main__":
    key = jax.random.PRNGKey(0)
    # 0.5 s of 16 kHz "audio" -> 49 fbank frames -> 13 stacked rows of 104 feats.
    n_samples = 8000
    x = 0.1 * jax.random.normal(key, (1, n_samples), dtype=jnp.float32)

    out = fbanks_and_stack(x)
    out = jax.block_until_ready(out)

    ref = _reference(x)
    assert out.shape == ref.shape == (13, 4 * NFILT), out.shape
    assert out.dtype == jnp.float32
    max_err = float(jnp.max(jnp.abs(out - ref)))
    assert max_err < 2e-3, max_err

    print("KERNEL_OK")
</pallas_src>

<mosaic_0001>
module attributes {stable_mosaic.version = 11 : i64} {
  func.func @_fused_fbank_stack_ln_kernel(%arg0: i32, %arg1: memref<64x512xf32, #tpu.memory_space<vmem>>, %arg2: memref<512x512xf32, #tpu.memory_space<vmem>>, %arg3: memref<256x128xf32, #tpu.memory_space<vmem>>, %arg4: memref<16x512xf32, #tpu.memory_space<vmem>>) attributes {dimension_semantics = [#tpu.dimension_semantics<parallel>], iteration_bounds = array<i64: 1>, scalar_prefetch = 0 : i64, scratch_operands = 0 : i64, tpu.core_type = #tpu.core_type<tc>, window_params = [{transform_indices = @transform_0, window_bounds = array<i64: 64, 512>}, {pipeline_mode = #tpu.pipeline_mode<synchronous>, transform_indices = @transform_1, window_bounds = array<i64: 512, 512>}, {pipeline_mode = #tpu.pipeline_mode<synchronous>, transform_indices = @transform_2, window_bounds = array<i64: 256, 128>}, {transform_indices = @transform_3, window_bounds = array<i64: 16, 512>}]} {
    %c0 = arith.constant 0 : index
    %c0_0 = arith.constant 0 : index
    %0 = vector.load %arg1[%c0, %c0_0] : memref<64x512xf32, #tpu.memory_space<vmem>>, vector<64x512xf32>
    %c0_1 = arith.constant 0 : index
    %c0_2 = arith.constant 0 : index
    %1 = vector.load %arg2[%c0_1, %c0_2] : memref<512x512xf32, #tpu.memory_space<vmem>>, vector<512x512xf32>
    %cst = arith.constant dense<0.000000e+00> : vector<64x512xf32>
    %2 = tpu.matmul %0, %1, %cst {dimension_numbers = #tpu.dot_dimension_numbers<[1], [0], [0], [1], [0, 0, 1, 1], [], []>} : vector<64x512xf32>, vector<512x512xf32>, vector<64x512xf32> -> vector<64x512xf32>
    %3 = vector.extract_strided_slice %2 {offsets = [0, 0], sizes = [64, 256], strides = [1, 1]} : vector<64x512xf32> to vector<64x256xf32>
    %4 = vector.extract_strided_slice %2 {offsets = [0, 256], sizes = [64, 256], strides = [1, 1]} : vector<64x512xf32> to vector<64x256xf32>
    %5 = arith.mulf %3, %3 : vector<64x256xf32>
    %6 = arith.mulf %4, %4 : vector<64x256xf32>
    %7 = arith.addf %5, %6 : vector<64x256xf32>
    %c0_3 = arith.constant 0 : index
    %c0_4 = arith.constant 0 : index
    %8 = vector.load %arg3[%c0_3, %c0_4] : memref<256x128xf32, #tpu.memory_space<vmem>>, vector<256x128xf32>
    %cst_5 = arith.constant dense<0.000000e+00> : vector<64x128xf32>
    %9 = tpu.matmul %7, %8, %cst_5 {dimension_numbers = #tpu.dot_dimension_numbers<[1], [0], [0], [1], [0, 0, 1, 1], [], []>} : vector<64x256xf32>, vector<256x128xf32>, vector<64x128xf32> -> vector<64x128xf32>
    %cst_6 = arith.constant 0.000000e+00 : f32
    %10 = vector.broadcast %cst_6 : f32 to vector<64x128xf32>
    %11 = arith.cmpf ole, %9, %10 : vector<64x128xf32>
    %cst_7 = arith.constant 2.22044605E-16 : f32
    %12 = vector.broadcast %cst_7 : f32 to vector<64x128xf32>
    %13 = arith.select %11, %12, %9 : vector<64x128xi1>, vector<64x128xf32>
    %14 = math.log %13 : vector<64x128xf32>
    %15 = tpu.iota {dimensions = array<i32: 1>} : vector<16x128xi32>
    %16 = tpu.iota {dimensions = array<i32: 0>} : vector<16x128xi32>
    %c26_i32 = arith.constant 26 : i32
    %17 = vector.broadcast %c26_i32 : i32 to vector<16x128xi32>
    %18 = arith.cmpi slt, %15, %17 : vector<16x128xi32>
    %19 = vector.extract_strided_slice %14 {offsets = [0, 0], sizes = [16, 128], strides = [1, 1]} : vector<64x128xf32> to vector<16x128xf32>
    %c64_i32 = arith.constant 64 : i32
    %20 = arith.muli %arg0, %c64_i32 : i32
    %c4_i32 = arith.constant 4 : i32
    %21 = vector.broadcast %c4_i32 : i32 to vector<16x128xi32>
    %22 = arith.muli %21, %16 : vector<16x128xi32>
    %23 = vector.broadcast %20 : i32 to vector<16x128xi32>
    %24 = arith.addi %23, %22 : vector<16x128xi32>
    %c0_i32 = arith.constant 0 : i32
    %25 = vector.broadcast %c0_i32 : i32 to vector<16x128xi32>
    %26 = arith.addi %24, %25 : vector<16x128xi32>
    %c49_i32 = arith.constant 49 : i32
    %27 = vector.broadcast %c49_i32 : i32 to vector<16x128xi32>
    %28 = arith.cmpi slt, %26, %27 : vector<16x128xi32>
    %29 = arith.andi %18, %28 : vector<16x128xi1>
    %cst_8 = arith.constant 0.000000e+00 : f32
    %30 = vector.broadcast %cst_8 : f32 to vector<16x128xf32>
    %31 = arith.select %29, %19, %30 : vector<16x128xi1>, vector<16x128xf32>
    %32 = vector.extract_strided_slice %14 {offsets = [16, 0], sizes = [16, 128], strides = [1, 1]} : vector<64x128xf32> to vector<16x128xf32>
    %c64_i32_9 = arith.constant 64 : i32
    %33 = arith.muli %arg0, %c64_i32_9 : i32
    %c4_i32_10 = arith.constant 4 : i32
    %34 = vector.broadcast %c4_i32_10 : i32 to vector<16x128xi32>
    %35 = arith.muli %34, %16 : vector<16x128xi32>
    %36 = vector.broadcast %33 : i32 to vector<16x128xi32>
    %37 = arith.addi %36, %35 : vector<16x128xi32>
    %c1_i32 = arith.constant 1 : i32
    %38 = vector.broadcast %c1_i32 : i32 to vector<16x128xi32>
    %39 = arith.addi %37, %38 : vector<16x128xi32>
    %c49_i32_11 = arith.constant 49 : i32
    %40 = vector.broadcast %c49_i32_11 : i32 to vector<16x128xi32>
    %41 = arith.cmpi slt, %39, %40 : vector<16x128xi32>
    %42 = arith.andi %18, %41 : vector<16x128xi1>
    %cst_12 = arith.constant 0.000000e+00 : f32
    %43 = vector.broadcast %cst_12 : f32 to vector<16x128xf32>
    %44 = arith.select %42, %32, %43 : vector<16x128xi1>, vector<16x128xf32>
    %45 = vector.extract_strided_slice %14 {offsets = [32, 0], sizes = [16, 128], strides = [1, 1]} : vector<64x128xf32> to vector<16x128xf32>
    %c64_i32_13 = arith.constant 64 : i32
    %46 = arith.muli %arg0, %c64_i32_13 : i32
    %c4_i32_14 = arith.constant 4 : i32
    %47 = vector.broadcast %c4_i32_14 : i32 to vector<16x128xi32>
    %48 = arith.muli %47, %16 : vector<16x128xi32>
    %49 = vector.broadcast %46 : i32 to vector<16x128xi32>
    %50 = arith.addi %49, %48 : vector<16x128xi32>
    %c2_i32 = arith.constant 2 : i32
    %51 = vector.broadcast %c2_i32 : i32 to vector<16x128xi32>
    %52 = arith.addi %50, %51 : vector<16x128xi32>
    %c49_i32_15 = arith.constant 49 : i32
    %53 = vector.broadcast %c49_i32_15 : i32 to vector<16x128xi32>
    %54 = arith.cmpi slt, %52, %53 : vector<16x128xi32>
    %55 = arith.andi %18, %54 : vector<16x128xi1>
    %cst_16 = arith.constant 0.000000e+00 : f32
    %56 = vector.broadcast %cst_16 : f32 to vector<16x128xf32>
    %57 = arith.select %55, %45, %56 : vector<16x128xi1>, vector<16x128xf32>
    %58 = vector.extract_strided_slice %14 {offsets = [48, 0], sizes = [16, 128], strides = [1, 1]} : vector<64x128xf32> to vector<16x128xf32>
    %c64_i32_17 = arith.constant 64 : i32
    %59 = arith.muli %arg0, %c64_i32_17 : i32
    %c4_i32_18 = arith.constant 4 : i32
    %60 = vector.broadcast %c4_i32_18 : i32 to vector<16x128xi32>
    %61 = arith.muli %60, %16 : vector<16x128xi32>
    %62 = vector.broadcast %59 : i32 to vector<16x128xi32>
    %63 = arith.addi %62, %61 : vector<16x128xi32>
    %c3_i32 = arith.constant 3 : i32
    %64 = vector.broadcast %c3_i32 : i32 to vector<16x128xi32>
    %65 = arith.addi %63, %64 : vector<16x128xi32>
    %c49_i32_19 = arith.constant 49 : i32
    %66 = vector.broadcast %c49_i32_19 : i32 to vector<16x128xi32>
    %67 = arith.cmpi slt, %65, %66 : vector<16x128xi32>
    %68 = arith.andi %18, %67 : vector<16x128xi1>
    %cst_20 = arith.constant 0.000000e+00 : f32
    %69 = vector.broadcast %cst_20 : f32 to vector<16x128xf32>
    %70 = arith.select %68, %58, %69 : vector<16x128xi1>, vector<16x128xf32>
    %71 = arith.addf %31, %44 : vector<16x128xf32>
    %72 = arith.addf %71, %57 : vector<16x128xf32>
    %73 = arith.addf %72, %70 : vector<16x128xf32>
    %cst_21 = arith.constant dense<0.000000e+00> : vector<16xf32>
    %74 = vector.multi_reduction <add>, %73, %cst_21 [1] : vector<16x128xf32> to vector<16xf32>
    %75 = vector.shape_cast %74 : vector<16xf32> to vector<16x1xf32>
    %cst_22 = arith.constant 0.00961538497 : f32
    %76 = vector.broadcast %cst_22 : f32 to vector<16x1xf32>
    %77 = arith.mulf %75, %76 : vector<16x1xf32>
    %cst_23 = arith.constant 0.000000e+00 : f32
    %78 = vector.broadcast %cst_23 : f32 to vector<16x1xf32>
    %79 = vector.broadcast %77 : vector<16x1xf32> to vector<16x128xf32>
    %80 = arith.subf %31, %79 : vector<16x128xf32>
    %cst_24 = arith.constant 0.000000e+00 : f32
    %81 = vector.broadcast %cst_24 : f32 to vector<16x128xf32>
    %82 = arith.select %18, %80, %81 : vector<16x128xi1>, vector<16x128xf32>
    %83 = arith.mulf %82, %82 : vector<16x128xf32>
    %cst_25 = arith.constant dense<0.000000e+00> : vector<16xf32>
    %84 = vector.multi_reduction <add>, %83, %cst_25 [1] : vector<16x128xf32> to vector<16xf32>
    %85 = vector.shape_cast %84 : vector<16xf32> to vector<16x1xf32>
    %86 = arith.addf %78, %85 : vector<16x1xf32>
    %87 = vector.broadcast %77 : vector<16x1xf32> to vector<16x128xf32>
    %88 = arith.subf %44, %87 : vector<16x128xf32>
    %cst_26 = arith.constant 0.000000e+00 : f32
    %89 = vector.broadcast %cst_26 : f32 to vector<16x128xf32>
    %90 = arith.select %18, %88, %89 : vector<16x128xi1>, vector<16x128xf32>
    %91 = arith.mulf %90, %90 : vector<16x128xf32>
    %cst_27 = arith.constant dense<0.000000e+00> : vector<16xf32>
    %92 = vector.multi_reduction <add>, %91, %cst_27 [1] : vector<16x128xf32> to vector<16xf32>
    %93 = vector.shape_cast %92 : vector<16xf32> to vector<16x1xf32>
    %94 = arith.addf %86, %93 : vector<16x1xf32>
    %95 = vector.broadcast %77 : vector<16x1xf32> to vector<16x128xf32>
    %96 = arith.subf %57, %95 : vector<16x128xf32>
    %cst_28 = arith.constant 0.000000e+00 : f32
    %97 = vector.broadcast %cst_28 : f32 to vector<16x128xf32>
    %98 = arith.select %18, %96, %97 : vector<16x128xi1>, vector<16x128xf32>
    %99 = arith.mulf %98, %98 : vector<16x128xf32>
    %cst_29 = arith.constant dense<0.000000e+00> : vector<16xf32>
    %100 = vector.multi_reduction <add>, %99, %cst_29 [1] : vector<16x128xf32> to vector<16xf32>
    %101 = vector.shape_cast %100 : vector<16xf32> to vector<16x1xf32>
    %102 = arith.addf %94, %101 : vector<16x1xf32>
    %103 = vector.broadcast %77 : vector<16x1xf32> to vector<16x128xf32>
    %104 = arith.subf %70, %103 : vector<16x128xf32>
    %cst_30 = arith.constant 0.000000e+00 : f32
    %105 = vector.broadcast %cst_30 : f32 to vector<16x128xf32>
    %106 = arith.select %18, %104, %105 : vector<16x128xi1>, vector<16x128xf32>
    %107 = arith.mulf %106, %106 : vector<16x128xf32>
    %cst_31 = arith.constant dense<0.000000e+00> : vector<16xf32>
    %108 = vector.multi_reduction <add>, %107, %cst_31 [1] : vector<16x128xf32> to vector<16xf32>
    %109 = vector.shape_cast %108 : vector<16xf32> to vector<16x1xf32>
    %110 = arith.addf %102, %109 : vector<16x1xf32>
    %cst_32 = arith.constant 0.00961538497 : f32
    %111 = vector.broadcast %cst_32 : f32 to vector<16x1xf32>
    %112 = arith.mulf %110, %111 : vector<16x1xf32>
    %cst_33 = arith.constant 9.99999974E-6 : f32
    %113 = vector.broadcast %cst_33 : f32 to vector<16x1xf32>
    %114 = arith.addf %112, %113 : vector<16x1xf32>
    %115 = math.rsqrt %114 : vector<16x1xf32>
    %116 = vector.broadcast %115 : vector<16x1xf32> to vector<16x128xf32>
    %117 = arith.mulf %82, %116 : vector<16x128xf32>
    %118 = vector.broadcast %115 : vector<16x1xf32> to vector<16x128xf32>
    %119 = arith.mulf %90, %118 : vector<16x128xf32>
    %120 = vector.broadcast %115 : vector<16x1xf32> to vector<16x128xf32>
    %121 = arith.mulf %98, %120 : vector<16x128xf32>
    %122 = vector.broadcast %115 : vector<16x1xf32> to vector<16x128xf32>
    %123 = arith.mulf %106, %122 : vector<16x128xf32>
    %124 = tpu.concatenate %117, %119, %121, %123 in 1 : vector<16x128xf32>, vector<16x128xf32>, vector<16x128xf32>, vector<16x128xf32> -> vector<16x512xf32>
    %c0_34 = arith.constant 0 : index
    %c0_35 = arith.constant 0 : index
    %125 = vector.load %arg4[%c0_34, %c0_35] : memref<16x512xf32, #tpu.memory_space<vmem>>, vector<16x512xf32>
    tpu.vector_store %arg4[%c0_34, %c0_35], %124 {strides = array<i32>} : memref<16x512xf32, #tpu.memory_space<vmem>>, vector<16x512xf32>,
    return
  }
  func.func @transform_0(%arg0: i32) -> (i32, i32) {
    %c0_i32 = arith.constant 0 : i32
    %c0_i32_0 = arith.constant 0 : i32
    return %arg0, %c0_i32 : i32, i32
  }
  func.func @transform_1(%arg0: i32) -> (i32, i32) {
    %c0_i32 = arith.constant 0 : i32
    %c0_i32_0 = arith.constant 0 : i32
    %c0_i32_1 = arith.constant 0 : i32
    return %c0_i32, %c0_i32_0 : i32, i32
  }
  func.func @transform_2(%arg0: i32) -> (i32, i32) {
    %c0_i32 = arith.constant 0 : i32
    %c0_i32_0 = arith.constant 0 : i32
    %c0_i32_1 = arith.constant 0 : i32
    return %c0_i32, %c0_i32_0 : i32, i32
  }
  func.func @transform_3(%arg0: i32) -> (i32, i32) {
    %c0_i32 = arith.constant 0 : i32
    %c0_i32_0 = arith.constant 0 : i32
    return %arg0, %c0_i32 : i32, i32
  }
}

</mosaic_0001>

<bundles_post_ra>
// kernel: tpu_custom_call.1
= control target key start
LH: loop header
LB: loop body
LE: loop exit
PB: predicated region body
PF: predicated region fallthrough
CT: control target
= control target key end

     0   :  { %8 = vsyncpa [#allocation3], 0  ;;  %s1929_s0 = inlined_call_operand.hbm [shape: f32[64,512], index: 0, kind: input, shape index: {}]   ;;  %s1930_s1 = inlined_call_operand.hbm [shape: f32[512,512], index: 1, kind: input, shape index: {}]   ;;  %s1931_s2 = inlined_call_operand.hbm [shape: f32[256,128], index: 2, kind: input, shape index: {}]   ;;  %s1932_s3 = inlined_call_operand.hbm [shape: f32[16,512], index: 3, kind: output, shape index: {}]  }
   0x1   :  { %9 = vsyncpa [#allocation6], 0 }
   0x2   :  { %10 = vsyncpa [#allocation4], 0  ;;  %s28_s14 = sshll.u32 %s1930_s1, 4  ;;  %s1546_s15 = smov [#allocation5]   ;;  %s29_s14 = int_to_ptr.hbm [resolvable:$true] %s28_s14 }
   0x3   :  { %s30_s16 = sshll.u32 %s1546_s15, 4  ;;  %s15_s19 = sshll.u32 %s1929_s0, 4  ;;  %s31_s16 = int_to_ptr.vmem [resolvable:$true] %s30_s16  ;;  %s16_s19 = int_to_ptr.hbm [resolvable:$true] %s15_s19 }
   0x4   :  { %s1547_s20 = smov 512   ;;  %s1548_s21 = smov 32  }
   0x5   :  { %36 = dma.hbm_to_vmem [thread:$0]  %s29_s14, 32768, %s31_s16, [#allocation6], %s1547_s20, %s1547_s20, %s1548_s21  }
   0x6   :  { %s1549_s22 = smov [#allocation2]   ;;  %s41_s1 = sshll.u32 %s1931_s2, 4  ;;  %s42_s1 = int_to_ptr.hbm [resolvable:$true] %s41_s1 }
   0x7   :  { %s17_s23 = sshll.u32 %s1549_s22, 4  ;;  %s1550_s0 = smov [#allocation7]   ;;  %s18_s23 = int_to_ptr.vmem [resolvable:$true] %s17_s23 }
   0x8   :  { %23 = dma.hbm_to_vmem [thread:$0]  %s16_s19, 4096, %s18_s23, [#allocation3], %s1547_s20, %s1547_s20, %s1548_s21  }
   0x9   :  { %s43_s26 = sshll.u32 %s1550_s0, 4  ;;  %s1551_s27 = smov 128   ;;  %s44_s26 = int_to_ptr.vmem [resolvable:$true] %s43_s26 }
   0xa   :  { %s1552_s28 = smov 8  }
   0xb   :  { %49 = dma.hbm_to_vmem [thread:$0]  %s42_s1, 4096, %s44_s26, [#allocation6], %s1551_s27, %s1551_s27, %s1552_s28  }
   0xc   :  { %1540 = dma.done.wait [#allocation3], 4096  }
   0xd   :  { %1541 = vsyncadd [#allocation3], 4294963200 }
   0xe   :  { %1542 = dma.done.wait [#allocation6], 36864  }
   0xf   :  { %1543 = vsyncadd [#allocation6], 4294930432  ;;  %v154_v0 = vld [vmem:[#allocation5 + $0x1e0] sm:$0xff]  ;;  %v1591_v33 = vld [vmem:[#allocation2 + $0x88] sm:$0xff]  ;;  %s1553_s2 = smov [#allocation8]   ;;  %s1348_s5 = sshll.u32 %s1932_s3, 4  ;;  %s1349_s5 = int_to_ptr.hbm [resolvable:$true] %s1348_s5 }
  0x10   :  { %v218_v1 = vld [vmem:[#allocation5 + $0x3e0] sm:$0xff]  ;;  %1362 = vmatpush.msra.mxu2 %v154_v0  ;;  %350 = vmatpush.msra.mxu0 %v154_v0  ;;  %v1597_v41 = vld [vmem:[#allocation2 + $0x8] sm:$0xff]  ;;  %s1346_s29 = sshll.u32 %s1553_s2, 4  ;;  %s1347_s29 = int_to_ptr.vmem [resolvable:$true] %s1346_s29 }
  0x11   :  { %v150_v2 = vld [vmem:[#allocation5 + $0x1c0] sm:$0xff]  ;;  %1378 = vmatpush.msra.mxu3 %v218_v1  ;;  %391 = vmatpush.msra.mxu1 %v218_v1  ;;  %v1603_v45 = vld [vmem:[#allocation2 + $0xa8] sm:$0xff] }
  0x12   :  { %v214_v3 = vld [vmem:[#allocation5 + $0x3c0] sm:$0xff]  ;;  %1363 = vmatpush.msra.mxu2 %v150_v2  ;;  %351 = vmatpush.msra.mxu0 %v150_v2  ;;  %v1609_v51 = vld [vmem:[#allocation2 + $0x28] sm:$0xff] }
  0x13   :  { %v146_v4 = vld [vmem:[#allocation5 + $0x1a0] sm:$0xff]  ;;  %1379 = vmatpush.msra.mxu3 %v214_v3  ;;  %392 = vmatpush.msra.mxu1 %v214_v3  ;;  %v1615_v57 = vld [vmem:[#allocation2 + $0xc8] sm:$0xff] }
  0x14   :  { %v210_v5 = vld [vmem:[#allocation5 + $0x3a0] sm:$0xff]  ;;  %1364 = vmatpush.msra.mxu2 %v146_v4  ;;  %352 = vmatpush.msra.mxu0 %v146_v4  ;;  %v1621_v63 = vld [vmem:[#allocation2 + $0x48] sm:$0xff] }
  0x15   :  { %v142_v6 = vld [vmem:[#allocation5 + $0x180] sm:$0xff]  ;;  %1380 = vmatpush.msra.mxu3 %v210_v5  ;;  %393 = vmatpush.msra.mxu1 %v210_v5  ;;  %v1627_v5 = vld [vmem:[#allocation2 + $0xe8] sm:$0xff] }
  0x16   :  { %v206_v7 = vld [vmem:[#allocation5 + $0x380] sm:$0xff]  ;;  %1365 = vmatpush.msra.mxu2 %v142_v6  ;;  %353 = vmatpush.msra.mxu0 %v142_v6 }
  0x17   :  { %v138_v8 = vld [vmem:[#allocation5 + $0x160] sm:$0xff]  ;;  %1381 = vmatpush.msra.mxu3 %v206_v7  ;;  %394 = vmatpush.msra.mxu1 %v206_v7 }
  0x18   :  { %v202_v9 = vld [vmem:[#allocation5 + $0x360] sm:$0xff]  ;;  %1366 = vmatpush.msra.mxu2 %v138_v8  ;;  %354 = vmatpush.msra.mxu0 %v138_v8 }
  0x19   :  { %v134_v10 = vld [vmem:[#allocation5 + $0x140] sm:$0xff]  ;;  %1382 = vmatpush.msra.mxu3 %v202_v9  ;;  %395 = vmatpush.msra.mxu1 %v202_v9 }
  0x1a   :  { %v198_v11 = vld [vmem:[#allocation5 + $0x340] sm:$0xff]  ;;  %1367 = vmatpush.msra.mxu2 %v134_v10  ;;  %355 = vmatpush.msra.mxu0 %v134_v10 }
  0x1b   :  { %v130_v12 = vld [vmem:[#allocation5 + $0x120] sm:$0xff]  ;;  %1383 = vmatpush.msra.mxu3 %v198_v11  ;;  %396 = vmatpush.msra.mxu1 %v198_v11  ;;  %v1633_v11 = vld [vmem:[#allocation2 + $0x68] sm:$0xff] }
  0x1c   :  { %v194_v13 = vld [vmem:[#allocation5 + $0x320] sm:$0xff]  ;;  %1368 = vmatpush.msra.mxu2 %v130_v12  ;;  %356 = vmatpush.msra.mxu0 %v130_v12 }
  0x1d   :  { %v126_v14 = vld [vmem:[#allocation5 + $0x100] sm:$0xff]  ;;  %1384 = vmatpush.msra.mxu3 %v194_v13  ;;  %397 = vmatpush.msra.mxu1 %v194_v13 }
  0x1e   :  { %v190_v15 = vld [vmem:[#allocation5 + $0x300] sm:$0xff]  ;;  %1369 = vmatpush.msra.mxu2 %v126_v14  ;;  %357 = vmatpush.msra.mxu0 %v126_v14 }
  0x1f   :  { %v122_v16 = vld [vmem:[#allocation5 + $0xe0] sm:$0xff]  ;;  %1385 = vmatpush.msra.mxu3 %v190_v15  ;;  %398 = vmatpush.msra.mxu1 %v190_v15 }
  0x20   :  { %v186_v17 = vld [vmem:[#allocation5 + $0x2e0] sm:$0xff]  ;;  %1370 = vmatpush.msra.mxu2 %v122_v16  ;;  %358 = vmatpush.msra.mxu0 %v122_v16  ;;  %v1637_v16 = vld [vmem:[#allocation2 + $0x10] sm:$0xff] }
  0x21   :  { %v118_v18 = vld [vmem:[#allocation5 + $0xc0] sm:$0xff]  ;;  %1386 = vmatpush.msra.mxu3 %v186_v17  ;;  %399 = vmatpush.msra.mxu1 %v186_v17  ;;  %v1639_v17 = vld [vmem:[#allocation2 + $0x18] sm:$0xff] }
  0x22   :  { %v182_v19 = vld [vmem:[#allocation5 + $0x2c0] sm:$0xff]  ;;  %1371 = vmatpush.msra.mxu2 %v118_v18  ;;  %359 = vmatpush.msra.mxu0 %v118_v18  ;;  %v283_v18 = vld [vmem:[#allocation5 + $0x5e8] sm:$0xff] }
  0x23   :  { %v114_v20 = vld [vmem:[#allocation5 + $0xa0] sm:$0xff]  ;;  %1387 = vmatpush.msra.mxu3 %v182_v19  ;;  %400 = vmatpush.msra.mxu1 %v182_v19  ;;  %v347_v19 = vld [vmem:[#allocation5 + $0x7e8] sm:$0xff] }
  0x24   :  { %v178_v21 = vld [vmem:[#allocation5 + $0x2a0] sm:$0xff]  ;;  %1372 = vmatpush.msra.mxu2 %v114_v20  ;;  %360 = vmatpush.msra.mxu0 %v114_v20  ;;  %v279_v20 = vld [vmem:[#allocation5 + $0x5c8] sm:$0xff] }
  0x25   :  { %v110_v22 = vld [vmem:[#allocation5 + $0x80] sm:$0xff]  ;;  %1388 = vmatpush.msra.mxu3 %v178_v21  ;;  %401 = vmatpush.msra.mxu1 %v178_v21  ;;  %v343_v21 = vld [vmem:[#allocation5 + $0x7c8] sm:$0xff] }
  0x26   :  { %v174_v23 = vld [vmem:[#allocation5 + $0x280] sm:$0xff]  ;;  %1373 = vmatpush.msra.mxu2 %v110_v22  ;;  %361 = vmatpush.msra.mxu0 %v110_v22  ;;  %v275_v22 = vld [vmem:[#allocation5 + $0x5a8] sm:$0xff] }
  0x27   :  { %v106_v24 = vld [vmem:[#allocation5 + $0x60] sm:$0xff]  ;;  %1389 = vmatpush.msra.mxu3 %v174_v23  ;;  %402 = vmatpush.msra.mxu1 %v174_v23  ;;  %v155_v23 = vld [vmem:[#allocation5 + $0x1e8] sm:$0xff] }
  0x28   :  { %v170_v25 = vld [vmem:[#allocation5 + $0x260] sm:$0xff]  ;;  %1374 = vmatpush.msra.mxu2 %v106_v24  ;;  %362 = vmatpush.msra.mxu0 %v106_v24  ;;  %v219_v24 = vld [vmem:[#allocation5 + $0x3e8] sm:$0xff] }
  0x29   :  { %v102_v26 = vld [vmem:[#allocation5 + $0x40] sm:$0xff]  ;;  %1390 = vmatpush.msra.mxu3 %v170_v25  ;;  %403 = vmatpush.msra.mxu1 %v170_v25  ;;  %v339_v25 = vld [vmem:[#allocation5 + $0x7a8] sm:$0xff] }
  0x2a   :  { %v166_v27 = vld [vmem:[#allocation5 + $0x240] sm:$0xff]  ;;  %1375 = vmatpush.msra.mxu2 %v102_v26  ;;  %363 = vmatpush.msra.mxu0 %v102_v26  ;;  %v151_v26 = vld [vmem:[#allocation5 + $0x1c8] sm:$0xff] }
  0x2b   :  { %v98_v28 = vld [vmem:[#allocation5 + $0x20] sm:$0xff]  ;;  %1391 = vmatpush.msra.mxu3 %v166_v27  ;;  %404 = vmatpush.msra.mxu1 %v166_v27  ;;  %v215_v27 = vld [vmem:[#allocation5 + $0x3c8] sm:$0xff] }
  0x2c   :  { %v162_v29 = vld [vmem:[#allocation5 + $0x220] sm:$0xff]  ;;  %1376 = vmatpush.msra.mxu2 %v98_v28  ;;  %364 = vmatpush.msra.mxu0 %v98_v28  ;;  %v271_v28 = vld [vmem:[#allocation5 + $0x588] sm:$0xff] }
  0x2d   :  { %v94_v30 = vld [vmem:[#allocation5] sm:$0xff]  ;;  %1392 = vmatpush.msra.mxu3 %v162_v29  ;;  %405 = vmatpush.msra.mxu1 %v162_v29  ;;  %v335_v29 = vld [vmem:[#allocation5 + $0x788] sm:$0xff] }
  0x2e   :  { %v158_v31 = vld [vmem:[#allocation5 + $0x200] sm:$0xff]  ;;  %1377 = vmatpush.msra.mxu2 %v94_v30  ;;  %365 = vmatpush.msra.mxu0 %v94_v30  ;;  %v1643_v30 = vld [vmem:[#allocation2 + $0x30] sm:$0xff] }
  0x2f   :  { %v1589_v32 = vld [vmem:[#allocation2 + $0x80] sm:$0xff]  ;;  %1393 = vmatpush.msra.mxu3 %v158_v31  ;;  %406 = vmatpush.msra.mxu1 %v158_v31  ;;  %v1645_v31 = vld [vmem:[#allocation2 + $0x38] sm:$0xff] }
  0x30   :  { %v282_v34 = vld [vmem:[#allocation5 + $0x5e0] sm:$0xff]  ;;  %378 = vmatmul.f32.vlgmr.msra.gmra.mxu2 %v1589_v32  ;;  %419 = vmatmul.f32.vlgmr.msra.gmra.mxu3 %v1591_v33 }
  0x31   :  { %v346_v35 = vld [vmem:[#allocation5 + $0x7e0] sm:$0xff]  ;;  %432 = vmatpush.msrb.mxu2 %v282_v34  ;;  %407 = vmatmul.f32.vlgmr.msra.gmra.mxu1 %v1597_v41  ;;  %v267_v34 = vld [vmem:[#allocation5 + $0x568] sm:$0xff] }
  0x32   :  { %v278_v36 = vld [vmem:[#allocation5 + $0x5c0] sm:$0xff]  ;;  %473 = vmatpush.msrb.mxu3 %v346_v35  ;;  %514 = vmatpush.msrb.mxu0 %v155_v23  ;;  %v331_v35 = vld [vmem:[#allocation5 + $0x768] sm:$0xff] }
  0x33   :  { %v342_v37 = vld [vmem:[#allocation5 + $0x7c0] sm:$0xff]  ;;  %433 = vmatpush.msrb.mxu2 %v278_v36  ;;  %555 = vmatpush.msrb.mxu1 %v219_v24  ;;  %v263_v36 = vld [vmem:[#allocation5 + $0x548] sm:$0xff] }
  0x34   :  { %v1595_v38 = vld [vmem:[#allocation2] sm:$0xff]  ;;  %474 = vmatpush.msrb.mxu3 %v342_v37  ;;  %515 = vmatpush.msrb.mxu0 %v151_v26  ;;  %v327_v37 = vld [vmem:[#allocation5 + $0x748] sm:$0xff] }
  0x35   :  { %v274_v39 = vld [vmem:[#allocation5 + $0x5a0] sm:$0xff]  ;;  %366 = vmatmul.f32.vlgmr.msra.gmra.mxu0 %v1595_v38  ;;  %556 = vmatpush.msrb.mxu1 %v215_v27  ;;  %v295_v23 = vld [vmem:[#allocation5 + $0x648] sm:$0xff] }
  0x36   :  { %v338_v40 = vld [vmem:[#allocation5 + $0x7a0] sm:$0xff]  ;;  %434 = vmatpush.msrb.mxu2 %v274_v39  ;;  %v147_v39 = vld [vmem:[#allocation5 + $0x1a8] sm:$0xff] }
  0x37   :  { %v270_v42 = vld [vmem:[#allocation5 + $0x580] sm:$0xff]  ;;  %475 = vmatpush.msrb.mxu3 %v338_v40  ;;  %v211_v40 = vld [vmem:[#allocation5 + $0x3a8] sm:$0xff]  ;;  %516 = vmatpush.msrb.mxu0 %v147_v39 }
  0x38   :  { %v334_v43 = vld [vmem:[#allocation5 + $0x780] sm:$0xff]  ;;  %435 = vmatpush.msrb.mxu2 %v270_v42  ;;  %422 = vmatmul.f32.gmra.mxu3 %v1603_v45  ;;  %v143_v42 = vld [vmem:[#allocation5 + $0x188] sm:$0xff] }
  0x39   :  { %v1601_v44 = vld [vmem:[#allocation2 + $0xa0] sm:$0xff]  ;;  %476 = vmatpush.msrb.mxu3 %v334_v43  ;;  %410 = vmatmul.f32.gmra.mxu1 %v1609_v51  ;;  %v207_v43 = vld [vmem:[#allocation5 + $0x388] sm:$0xff] }
  0x3a   :  { %v266_v46 = vld [vmem:[#allocation5 + $0x560] sm:$0xff]  ;;  %381 = vmatmul.f32.gmra.mxu2 %v1601_v44  ;;  %557 = vmatpush.msrb.mxu1 %v211_v40  ;;  %v119_v24 = vld [vmem:[#allocation5 + $0xc8] sm:$0xff] }
  0x3b   :  { %v330_v47 = vld [vmem:[#allocation5 + $0x760] sm:$0xff]  ;;  %436 = vmatpush.msrb.mxu2 %v266_v46  ;;  %v259_v46 = vld [vmem:[#allocation5 + $0x528] sm:$0xff]  ;;  %517 = vmatpush.msrb.mxu0 %v143_v42 }
  0x3c   :  { %v262_v48 = vld [vmem:[#allocation5 + $0x540] sm:$0xff]  ;;  %477 = vmatpush.msrb.mxu3 %v330_v47  ;;  %v323_v47 = vld [vmem:[#allocation5 + $0x728] sm:$0xff]  ;;  %558 = vmatpush.msrb.mxu1 %v207_v43 }
  0x3d   :  { %v326_v49 = vld [vmem:[#allocation5 + $0x740] sm:$0xff]  ;;  %437 = vmatpush.msrb.mxu2 %v262_v48  ;;  %v139_v48 = vld [vmem:[#allocation5 + $0x168] sm:$0xff] }
  0x3e   :  { %v1607_v50 = vld [vmem:[#allocation2 + $0x20] sm:$0xff]  ;;  %478 = vmatpush.msrb.mxu3 %v326_v49  ;;  %v203_v49 = vld [vmem:[#allocation5 + $0x368] sm:$0xff]  ;;  %518 = vmatpush.msrb.mxu0 %v139_v48  ;;  %v348_v48 = vld [vmem:[#allocation5 + $0x7f0] sm:$0xff] }
  0x3f   :  { %v258_v52 = vld [vmem:[#allocation5 + $0x520] sm:$0xff]  ;;  %369 = vmatmul.f32.gmra.mxu0 %v1607_v50  ;;  %559 = vmatpush.msrb.mxu1 %v203_v49  ;;  %v227_v26 = vld [vmem:[#allocation5 + $0x428] sm:$0xff] }
  0x40   :  { %v322_v53 = vld [vmem:[#allocation5 + $0x720] sm:$0xff]  ;;  %438 = vmatpush.msrb.mxu2 %v258_v52  ;;  %425 = vmatmul.f32.gmra.mxu3 %v1615_v57  ;;  %v255_v52 = vld [vmem:[#allocation5 + $0x508] sm:$0xff] }
  0x41   :  { %v254_v54 = vld [vmem:[#allocation5 + $0x500] sm:$0xff]  ;;  %479 = vmatpush.msrb.mxu3 %v322_v53  ;;  %413 = vmatmul.f32.gmra.mxu1 %v1621_v63  ;;  %v319_v53 = vld [vmem:[#allocation5 + $0x708] sm:$0xff] }
  0x42   :  { %v318_v55 = vld [vmem:[#allocation5 + $0x700] sm:$0xff]  ;;  %439 = vmatpush.msrb.mxu2 %v254_v54  ;;  %v1649_v54 = vld [vmem:[#allocation2 + $0x50] sm:$0xff]  ;;  %v291_v27 = vld [vmem:[#allocation5 + $0x628] sm:$0xff] }
  0x43   :  { %v1613_v56 = vld [vmem:[#allocation2 + $0xc0] sm:$0xff]  ;;  %480 = vmatpush.msrb.mxu3 %v318_v55  ;;  %v1651_v55 = vld [vmem:[#allocation2 + $0x58] sm:$0xff]  ;;  %v111_v39 = vld [vmem:[#allocation5 + $0x88] sm:$0xff] }
  0x44   :  { %v250_v58 = vld [vmem:[#allocation5 + $0x4e0] sm:$0xff]  ;;  %384 = vmatmul.f32.gmra.mxu2 %v1613_v56  ;;  %v175_v40 = vld [vmem:[#allocation5 + $0x288] sm:$0xff] }
  0x45   :  { %v314_v59 = vld [vmem:[#allocation5 + $0x6e0] sm:$0xff]  ;;  %440 = vmatpush.msrb.mxu2 %v250_v58  ;;  %v251_v58 = vld [vmem:[#allocation5 + $0x4e8] sm:$0xff] }
  0x46   :  { %v246_v60 = vld [vmem:[#allocation5 + $0x4c0] sm:$0xff]  ;;  %481 = vmatpush.msrb.mxu3 %v314_v59  ;;  %v315_v59 = vld [vmem:[#allocation5 + $0x6e8] sm:$0xff] }
  0x47   :  { %v310_v61 = vld [vmem:[#allocation5 + $0x6c0] sm:$0xff]  ;;  %441 = vmatpush.msrb.mxu2 %v246_v60  ;;  %v135_v60 = vld [vmem:[#allocation5 + $0x148] sm:$0xff] }
  0x48   :  { %v1619_v62 = vld [vmem:[#allocation2 + $0x40] sm:$0xff]  ;;  %482 = vmatpush.msrb.mxu3 %v310_v61  ;;  %v199_v61 = vld [vmem:[#allocation5 + $0x348] sm:$0xff]  ;;  %519 = vmatpush.msrb.mxu0 %v135_v60  ;;  %v1667_v60 = vld [vmem:[#allocation2 + $0xb0] sm:$0xff] }
  0x49   :  { %v242_v0 = vld [vmem:[#allocation5 + $0x4a0] sm:$0xff]  ;;  %372 = vmatmul.f32.gmra.mxu0 %v1619_v62  ;;  %428 = vmatmul.f32.gmra.mxu3 %v1627_v5  ;;  %v107_v42 = vld [vmem:[#allocation5 + $0x68] sm:$0xff] }
  0x4a   :  { %v306_v1 = vld [vmem:[#allocation5 + $0x6a0] sm:$0xff]  ;;  %442 = vmatpush.msrb.mxu2 %v242_v0  ;;  %416 = vmatmul.f32.gmra.mxu1 %v1633_v11  ;;  %v247_v0 = vld [vmem:[#allocation5 + $0x4c8] sm:$0xff] }
  0x4b   :  { %v238_v2 = vld [vmem:[#allocation5 + $0x480] sm:$0xff]  ;;  %483 = vmatpush.msrb.mxu3 %v306_v1  ;;  %v311_v1 = vld [vmem:[#allocation5 + $0x6c8] sm:$0xff]  ;;  %560 = vmatpush.msrb.mxu1 %v199_v61  ;;  %v1669_v61 = vld [vmem:[#allocation2 + $0xb8] sm:$0xff] }
  0x4c   :  { %v302_v3 = vld [vmem:[#allocation5 + $0x680] sm:$0xff]  ;;  %443 = vmatpush.msrb.mxu2 %v238_v2  ;;  %v131_v2 = vld [vmem:[#allocation5 + $0x128] sm:$0xff] }
  0x4d   :  { %v1625_v4 = vld [vmem:[#allocation2 + $0xe0] sm:$0xff]  ;;  %484 = vmatpush.msrb.mxu3 %v302_v3  ;;  %v195_v3 = vld [vmem:[#allocation5 + $0x328] sm:$0xff]  ;;  %520 = vmatpush.msrb.mxu0 %v131_v2  ;;  %v156_v2 = vld [vmem:[#allocation5 + $0x1f0] sm:$0xff] }
  0x4e   :  { %v234_v6 = vld [vmem:[#allocation5 + $0x460] sm:$0xff]  ;;  %387 = vmatmul.f32.gmra.mxu2 %v1625_v4  ;;  %561 = vmatpush.msrb.mxu1 %v195_v3  ;;  %v171_v43 = vld [vmem:[#allocation5 + $0x268] sm:$0xff]  ;;  %v220_v3 = vld [vmem:[#allocation5 + $0x3f0] sm:$0xff] }
  0x4f   :  { %v298_v7 = vld [vmem:[#allocation5 + $0x660] sm:$0xff]  ;;  %444 = vmatpush.msrb.mxu2 %v234_v6  ;;  %v243_v6 = vld [vmem:[#allocation5 + $0x4a8] sm:$0xff] }
  0x50   :  { %v230_v8 = vld [vmem:[#allocation5 + $0x440] sm:$0xff]  ;;  %485 = vmatpush.msrb.mxu3 %v298_v7  ;;  %v307_v7 = vld [vmem:[#allocation5 + $0x6a8] sm:$0xff] }
  0x51   :  { %v294_v9 = vld [vmem:[#allocation5 + $0x640] sm:$0xff]  ;;  %445 = vmatpush.msrb.mxu2 %v230_v8  ;;  %v127_v8 = vld [vmem:[#allocation5 + $0x108] sm:$0xff] }
  0x52   :  { %v1631_v10 = vld [vmem:[#allocation2 + $0x60] sm:$0xff]  ;;  %486 = vmatpush.msrb.mxu3 %v294_v9  ;;  %v191_v9 = vld [vmem:[#allocation5 + $0x308] sm:$0xff]  ;;  %521 = vmatpush.msrb.mxu0 %v127_v8  ;;  %v152_v8 = vld [vmem:[#allocation5 + $0x1d0] sm:$0xff] }
  0x53   :  { %v226_v12 = vld [vmem:[#allocation5 + $0x420] sm:$0xff]  ;;  %375 = vmatmul.f32.gmra.mxu0 %v1631_v10  ;;  %562 = vmatpush.msrb.mxu1 %v191_v9  ;;  %v167_v49 = vld [vmem:[#allocation5 + $0x248] sm:$0xff]  ;;  %v216_v9 = vld [vmem:[#allocation5 + $0x3d0] sm:$0xff] }
  0x54   :  { %v290_v13 = vld [vmem:[#allocation5 + $0x620] sm:$0xff]  ;;  %446 = vmatpush.msrb.mxu2 %v226_v12  ;;  %v239_v12 = vld [vmem:[#allocation5 + $0x488] sm:$0xff] }
  0x55   :  { %v222_v14 = vld [vmem:[#allocation5 + $0x400] sm:$0xff]  ;;  %487 = vmatpush.msrb.mxu3 %v290_v13  ;;  %v303_v13 = vld [vmem:[#allocation5 + $0x688] sm:$0xff] }
  0x56   :  { %v286_v15 = vld [vmem:[#allocation5 + $0x600] sm:$0xff]  ;;  %447 = vmatpush.msrb.mxu2 %v222_v14  ;;  %v1655_v14 = vld [vmem:[#allocation2 + $0x70] sm:$0xff] }
  0x57   :  { %488 = vmatpush.msrb.mxu3 %v286_v15  ;;  %448 = vmatmul.f32.vlgmr.msrb.gmra.mxu2 %v1637_v16  ;;  %v1657_v15 = vld [vmem:[#allocation2 + $0x78] sm:$0xff] }
  0x58   :  { %489 = vmatmul.f32.vlgmr.msrb.gmra.mxu3 %v1639_v17  ;;  %596 = vmatpush.msra.mxu2 %v283_v18  ;;  %v235_v18 = vld [vmem:[#allocation5 + $0x468] sm:$0xff] }
  0x59   :  { %637 = vmatpush.msra.mxu3 %v347_v19  ;;  %v299_v19 = vld [vmem:[#allocation5 + $0x668] sm:$0xff] }
  0x5a   :  { %597 = vmatpush.msra.mxu2 %v279_v20  ;;  %v123_v20 = vld [vmem:[#allocation5 + $0xe8] sm:$0xff] }
  0x5b   :  { %638 = vmatpush.msra.mxu3 %v343_v21  ;;  %v187_v21 = vld [vmem:[#allocation5 + $0x2e8] sm:$0xff]  ;;  %522 = vmatpush.msrb.mxu0 %v123_v20  ;;  %v1675_v20 = vld [vmem:[#allocation2 + $0xd0] sm:$0xff] }
  0x5c   :  { %598 = vmatpush.msra.mxu2 %v275_v22  ;;  %v231_v22 = vld [vmem:[#allocation5 + $0x448] sm:$0xff]  ;;  %563 = vmatpush.msrb.mxu1 %v187_v21  ;;  %v1677_v21 = vld [vmem:[#allocation2 + $0xd8] sm:$0xff] }
  0x5d   :  { %639 = vmatpush.msra.mxu3 %v339_v25  ;;  %v183_v25 = vld [vmem:[#allocation5 + $0x2c8] sm:$0xff]  ;;  %523 = vmatpush.msrb.mxu0 %v119_v24  ;;  %v268_v24 = vld [vmem:[#allocation5 + $0x570] sm:$0xff] }
  0x5e   :  { %599 = vmatpush.msra.mxu2 %v271_v28  ;;  %v115_v28 = vld [vmem:[#allocation5 + $0xa8] sm:$0xff]  ;;  %564 = vmatpush.msrb.mxu1 %v183_v25  ;;  %v332_v25 = vld [vmem:[#allocation5 + $0x770] sm:$0xff] }
  0x5f   :  { %640 = vmatpush.msra.mxu3 %v335_v29  ;;  %451 = vmatmul.f32.gmra.mxu2 %v1643_v30  ;;  %v179_v29 = vld [vmem:[#allocation5 + $0x2a8] sm:$0xff] }
  0x60   :  { %492 = vmatmul.f32.gmra.mxu3 %v1645_v31  ;;  %600 = vmatpush.msra.mxu2 %v267_v34  ;;  %v223_v34 = vld [vmem:[#allocation5 + $0x408] sm:$0xff] }
  0x61   :  { %641 = vmatpush.msra.mxu3 %v331_v35  ;;  %v287_v35 = vld [vmem:[#allocation5 + $0x608] sm:$0xff]  ;;  %524 = vmatpush.msrb.mxu0 %v115_v28  ;;  %v264_v28 = vld [vmem:[#allocation5 + $0x550] sm:$0xff] }
  0x62   :  { %601 = vmatpush.msra.mxu2 %v263_v36  ;;  %v1661_v36 = vld [vmem:[#allocation2 + $0x90] sm:$0xff]  ;;  %565 = vmatpush.msrb.mxu1 %v179_v29 }
  0x63   :  { %642 = vmatpush.msra.mxu3 %v327_v37  ;;  %v1663_v37 = vld [vmem:[#allocation2 + $0x98] sm:$0xff]  ;;  %525 = vmatpush.msrb.mxu0 %v111_v39  ;;  %v328_v29 = vld [vmem:[#allocation5 + $0x750] sm:$0xff] }
  0x64   :  { %602 = vmatpush.msra.mxu2 %v259_v46  ;;  %v284_v46 = vld [vmem:[#allocation5 + $0x5f0] sm:$0xff]  ;;  %566 = vmatpush.msrb.mxu1 %v175_v40 }
  0x65   :  { %643 = vmatpush.msra.mxu3 %v323_v47  ;;  %v103_v47 = vld [vmem:[#allocation5 + $0x48] sm:$0xff]  ;;  %526 = vmatpush.msrb.mxu0 %v107_v42  ;;  %v136_v39 = vld [vmem:[#allocation5 + $0x150] sm:$0xff] }
  0x66   :  { %603 = vmatpush.msra.mxu2 %v255_v52  ;;  %v280_v52 = vld [vmem:[#allocation5 + $0x5d0] sm:$0xff]  ;;  %567 = vmatpush.msrb.mxu1 %v171_v43 }
  0x67   :  { %644 = vmatpush.msra.mxu3 %v319_v53  ;;  %454 = vmatmul.f32.gmra.mxu2 %v1649_v54  ;;  %v344_v53 = vld [vmem:[#allocation5 + $0x7d0] sm:$0xff] }
  0x68   :  { %495 = vmatmul.f32.gmra.mxu3 %v1651_v55  ;;  %604 = vmatpush.msra.mxu2 %v251_v58  ;;  %v99_v58 = vld [vmem:[#allocation5 + $0x28] sm:$0xff]  ;;  %v200_v40 = vld [vmem:[#allocation5 + $0x350] sm:$0xff] }
  0x69   :  { %645 = vmatpush.msra.mxu3 %v315_v59  ;;  %v163_v59 = vld [vmem:[#allocation5 + $0x228] sm:$0xff]  ;;  %527 = vmatpush.msrb.mxu0 %v103_v47  ;;  %v260_v42 = vld [vmem:[#allocation5 + $0x530] sm:$0xff] }
  0x6a   :  { %605 = vmatpush.msra.mxu2 %v247_v0  ;;  %568 = vmatpush.msrb.mxu1 %v167_v49  ;;  %v95_v0 = vld [vmem:[#allocation5 + $0x8] sm:$0xff]  ;;  %v324_v43 = vld [vmem:[#allocation5 + $0x730] sm:$0xff] }
  0x6b   :  { %646 = vmatpush.msra.mxu3 %v311_v1  ;;  %v159_v1 = vld [vmem:[#allocation5 + $0x208] sm:$0xff]  ;;  %528 = vmatpush.msrb.mxu0 %v99_v58  ;;  %v196_v47 = vld [vmem:[#allocation5 + $0x330] sm:$0xff] }
  0x6c   :  { %606 = vmatpush.msra.mxu2 %v243_v6  ;;  %569 = vmatpush.msrb.mxu1 %v163_v59  ;;  %v276_v6 = vld [vmem:[#allocation5 + $0x5b0] sm:$0xff] }
  0x6d   :  { %647 = vmatpush.msra.mxu3 %v307_v7  ;;  %529 = vmatpush.msrb.mxu0 %v95_v0  ;;  %v340_v7 = vld [vmem:[#allocation5 + $0x7b0] sm:$0xff] }
  0x6e   :  { %607 = vmatpush.msra.mxu2 %v239_v12  ;;  %570 = vmatpush.msrb.mxu1 %v159_v1  ;;  %v272_v12 = vld [vmem:[#allocation5 + $0x590] sm:$0xff] }
  0x6f   :  { %648 = vmatpush.msra.mxu3 %v303_v13  ;;  %457 = vmatmul.f32.gmra.mxu2 %v1655_v14  ;;  %v336_v13 = vld [vmem:[#allocation5 + $0x790] sm:$0xff] }
  0x70   :  { %498 = vmatmul.f32.gmra.mxu3 %v1657_v15  ;;  %608 = vmatpush.msra.mxu2 %v235_v18  ;;  %v148_v18 = vld [vmem:[#allocation5 + $0x1b0] sm:$0xff] }
  0x71   :  { %649 = vmatpush.msra.mxu3 %v299_v19  ;;  %530 = vmatmul.f32.vlgmr.msrb.gmra.mxu0 %v1595_v38  ;;  %v212_v19 = vld [vmem:[#allocation5 + $0x3b0] sm:$0xff] }
  0x72   :  { %609 = vmatpush.msra.mxu2 %v231_v22  ;;  %571 = vmatmul.f32.vlgmr.msrb.gmra.mxu1 %v1597_v41  ;;  %v144_v22 = vld [vmem:[#allocation5 + $0x190] sm:$0xff] }
  0x73   :  { %650 = vmatpush.msra.mxu3 %v295_v23  ;;  %678 = vmatpush.msra.mxu0 %v156_v2  ;;  %v208_v23 = vld [vmem:[#allocation5 + $0x390] sm:$0xff] }
  0x74   :  { %610 = vmatpush.msra.mxu2 %v227_v26  ;;  %719 = vmatpush.msra.mxu1 %v220_v3  ;;  %v140_v26 = vld [vmem:[#allocation5 + $0x170] sm:$0xff] }
  0x75   :  { %651 = vmatpush.msra.mxu3 %v291_v27  ;;  %679 = vmatpush.msra.mxu0 %v152_v8  ;;  %v204_v27 = vld [vmem:[#allocation5 + $0x370] sm:$0xff] }
  0x76   :  { %611 = vmatpush.msra.mxu2 %v223_v34  ;;  %720 = vmatpush.msra.mxu1 %v216_v9  ;;  %v1683_v34 = vld [vmem:[#allocation2 + $0xf0] sm:$0xff] }
  0x77   :  { %652 = vmatpush.msra.mxu3 %v287_v35  ;;  %460 = vmatmul.f32.gmra.mxu2 %v1661_v36  ;;  %v1685_v35 = vld [vmem:[#allocation2 + $0xf8] sm:$0xff]  ;;  %v320_v49 = vld [vmem:[#allocation5 + $0x710] sm:$0xff] }
  0x78   :  { %501 = vmatmul.f32.gmra.mxu3 %v1663_v37  ;;  %760 = vmatpush.msrb.mxu2 %v284_v46  ;;  %v132_v46 = vld [vmem:[#allocation5 + $0x130] sm:$0xff] }
  0x79   :  { %801 = vmatpush.msrb.mxu3 %v348_v48  ;;  %680 = vmatpush.msra.mxu0 %v148_v18  ;;  %v256_v48 = vld [vmem:[#allocation5 + $0x510] sm:$0xff] }
  0x7a   :  { %761 = vmatpush.msrb.mxu2 %v280_v52  ;;  %721 = vmatpush.msra.mxu1 %v212_v19  ;;  %v128_v52 = vld [vmem:[#allocation5 + $0x110] sm:$0xff] }
  0x7b   :  { %802 = vmatpush.msrb.mxu3 %v344_v53  ;;  %681 = vmatpush.msra.mxu0 %v144_v22  ;;  %v192_v53 = vld [vmem:[#allocation5 + $0x310] sm:$0xff] }
  0x7c   :  { %762 = vmatpush.msrb.mxu2 %v276_v6  ;;  %722 = vmatpush.msra.mxu1 %v208_v23  ;;  %v252_v58 = vld [vmem:[#allocation5 + $0x4f0] sm:$0xff] }
  0x7d   :  { %803 = vmatpush.msrb.mxu3 %v340_v7  ;;  %533 = vmatmul.f32.gmra.mxu0 %v1607_v50  ;;  %v316_v59 = vld [vmem:[#allocation5 + $0x6f0] sm:$0xff] }
  0x7e   :  { %763 = vmatpush.msrb.mxu2 %v272_v12  ;;  %574 = vmatmul.f32.gmra.mxu1 %v1609_v51  ;;  %v124_v0 = vld [vmem:[#allocation5 + $0xf0] sm:$0xff] }
  0x7f   :  { %463 = vmatmul.f32.gmra.mxu2 %v1667_v60  ;;  %804 = vmatpush.msrb.mxu3 %v336_v13  ;;  %v188_v1 = vld [vmem:[#allocation5 + $0x2f0] sm:$0xff] }
  0x80   :  { %504 = vmatmul.f32.gmra.mxu3 %v1669_v61  ;;  %764 = vmatpush.msrb.mxu2 %v268_v24  ;;  %v248_v2 = vld [vmem:[#allocation5 + $0x4d0] sm:$0xff] }
  0x81   :  { %805 = vmatpush.msrb.mxu3 %v332_v25  ;;  %682 = vmatpush.msra.mxu0 %v140_v26  ;;  %v312_v3 = vld [vmem:[#allocation5 + $0x6d0] sm:$0xff] }
  0x82   :  { %723 = vmatpush.msra.mxu1 %v204_v27  ;;  %765 = vmatpush.msrb.mxu2 %v264_v28  ;;  %v120_v6 = vld [vmem:[#allocation5 + $0xd0] sm:$0xff] }
  0x83   :  { %806 = vmatpush.msrb.mxu3 %v328_v29  ;;  %683 = vmatpush.msra.mxu0 %v136_v39  ;;  %v184_v7 = vld [vmem:[#allocation5 + $0x2d0] sm:$0xff] }
  0x84   :  { %724 = vmatpush.msra.mxu1 %v200_v40  ;;  %766 = vmatpush.msrb.mxu2 %v260_v42  ;;  %v244_v8 = vld [vmem:[#allocation5 + $0x4b0] sm:$0xff] }
  0x85   :  { %536 = vmatmul.f32.gmra.mxu0 %v1619_v62  ;;  %807 = vmatpush.msrb.mxu3 %v324_v43  ;;  %v308_v9 = vld [vmem:[#allocation5 + $0x6b0] sm:$0xff] }
  0x86   :  { %577 = vmatmul.f32.gmra.mxu1 %v1621_v63  ;;  %684 = vmatpush.msra.mxu0 %v132_v46  ;;  %v116_v12 = vld [vmem:[#allocation5 + $0xb0] sm:$0xff] }
  0x87   :  { %466 = vmatmul.f32.gmra.mxu2 %v1675_v20  ;;  %725 = vmatpush.msra.mxu1 %v196_v47  ;;  %v180_v13 = vld [vmem:[#allocation5 + $0x2b0] sm:$0xff] }
  0x88   :  { %507 = vmatmul.f32.gmra.mxu3 %v1677_v21  ;;  %767 = vmatpush.msrb.mxu2 %v256_v48  ;;  %v240_v18 = vld [vmem:[#allocation5 + $0x490] sm:$0xff] }
  0x89   :  { %808 = vmatpush.msrb.mxu3 %v320_v49  ;;  %685 = vmatpush.msra.mxu0 %v128_v52  ;;  %v304_v19 = vld [vmem:[#allocation5 + $0x690] sm:$0xff] }
  0x8a   :  { %726 = vmatpush.msra.mxu1 %v192_v53  ;;  %768 = vmatpush.msrb.mxu2 %v252_v58  ;;  %v112_v22 = vld [vmem:[#allocation5 + $0x90] sm:$0xff]  ;;  %v157_v53 = vld [vmem:[#allocation5 + $0x1f8] sm:$0xff] }
  0x8b   :  { %809 = vmatpush.msrb.mxu3 %v316_v59  ;;  %686 = vmatpush.msra.mxu0 %v124_v0  ;;  %v176_v23 = vld [vmem:[#allocation5 + $0x290] sm:$0xff]  ;;  %v221_v58 = vld [vmem:[#allocation5 + $0x3f8] sm:$0xff] }
  0x8c   :  { %727 = vmatpush.msra.mxu1 %v188_v1  ;;  %769 = vmatpush.msrb.mxu2 %v248_v2  ;;  %v236_v24 = vld [vmem:[#allocation5 + $0x470] sm:$0xff]  ;;  %v281_v59 = vld [vmem:[#allocation5 + $0x5d8] sm:$0xff] }
  0x8d   :  { %539 = vmatmul.f32.gmra.mxu0 %v1631_v10  ;;  %810 = vmatpush.msrb.mxu3 %v312_v3  ;;  %v172_v25 = vld [vmem:[#allocation5 + $0x270] sm:$0xff]  ;;  %v345_v0 = vld [vmem:[#allocation5 + $0x7d8] sm:$0xff] }
  0x8e   :  { %580 = vmatmul.f32.gmra.mxu1 %v1633_v11  ;;  %687 = vmatpush.msra.mxu0 %v120_v6  ;;  %v232_v26 = vld [vmem:[#allocation5 + $0x450] sm:$0xff]  ;;  %v153_v1 = vld [vmem:[#allocation5 + $0x1d8] sm:$0xff] }
  0x8f   :  { %469 = vmatmul.f32.gmra.mxu2 %v1683_v34  ;;  %728 = vmatpush.msra.mxu1 %v184_v7  ;;  %v296_v27 = vld [vmem:[#allocation5 + $0x650] sm:$0xff]  ;;  %v217_v2 = vld [vmem:[#allocation5 + $0x3d8] sm:$0xff] }
  0x90   :  { %510 = vmatmul.f32.gmra.mxu3 %v1685_v35  ;;  %770 = vmatpush.msrb.mxu2 %v244_v8  ;;  %v104_v28 = vld [vmem:[#allocation5 + $0x50] sm:$0xff]  ;;  %v149_v8 = vld [vmem:[#allocation5 + $0x1b8] sm:$0xff] }
  0x91   :  { %811 = vmatpush.msrb.mxu3 %v308_v9  ;;  %688 = vmatpush.msra.mxu0 %v116_v12  ;;  %v168_v29 = vld [vmem:[#allocation5 + $0x250] sm:$0xff]  ;;  %v213_v9 = vld [vmem:[#allocation5 + $0x3b8] sm:$0xff] }
  0x92   :  { %729 = vmatpush.msra.mxu1 %v180_v13  ;;  %771 = vmatpush.msrb.mxu2 %v240_v18  ;;  %v228_v39 = vld [vmem:[#allocation5 + $0x430] sm:$0xff]  ;;  %v273_v12 = vld [vmem:[#allocation5 + $0x598] sm:$0xff] }
  0x93   :  { %812 = vmatpush.msrb.mxu3 %v304_v19  ;;  %689 = vmatpush.msra.mxu0 %v112_v22  ;;  %v164_v40 = vld [vmem:[#allocation5 + $0x230] sm:$0xff]  ;;  %v145_v13 = vld [vmem:[#allocation5 + $0x198] sm:$0xff] }
  0x94   :  { %730 = vmatpush.msra.mxu1 %v176_v23  ;;  %772 = vmatpush.msrb.mxu2 %v236_v24  ;;  %v224_v42 = vld [vmem:[#allocation5 + $0x410] sm:$0xff]  ;;  %v269_v18 = vld [vmem:[#allocation5 + $0x578] sm:$0xff] }
  0x95   :  { %542 = vmatmul.f32.gmra.mxu0 %v1589_v32  ;;  %v300_v32 = vld [vmem:[#allocation5 + $0x670] sm:$0xff]  ;;  %v333_v19 = vld [vmem:[#allocation5 + $0x778] sm:$0xff] }
  0x96   :  { %583 = vmatmul.f32.gmra.mxu1 %v1591_v33  ;;  %813 = vmatpush.msrb.mxu3 %v300_v32  ;;  %v108_v33 = vld [vmem:[#allocation5 + $0x70] sm:$0xff]  ;;  %v141_v32 = vld [vmem:[#allocation5 + $0x178] sm:$0xff] }
  0x97   :  { %612 = vmatmul.f32.vlgmr.msra.gmra.mxu2 %v1637_v16  ;;  %690 = vmatpush.msra.mxu0 %v108_v33  ;;  %v288_v43 = vld [vmem:[#allocation5 + $0x610] sm:$0xff]  ;;  %v205_v33 = vld [vmem:[#allocation5 + $0x378] sm:$0xff] }
  0x98   :  { %653 = vmatmul.f32.vlgmr.msra.gmra.mxu3 %v1639_v17  ;;  %731 = vmatpush.msra.mxu1 %v172_v25  ;;  %v96_v46 = vld [vmem:[#allocation5 + $0x10] sm:$0xff]  ;;  %v265_v25 = vld [vmem:[#allocation5 + $0x558] sm:$0xff] }
  0x99   :  { %773 = vmatpush.msrb.mxu2 %v232_v26  ;;  %814 = vmatpush.msrb.mxu3 %v296_v27  ;;  %v160_v47 = vld [vmem:[#allocation5 + $0x210] sm:$0xff] }
  0x9a   :  { %691 = vmatpush.msra.mxu0 %v104_v28  ;;  %732 = vmatpush.msra.mxu1 %v168_v29  ;;  %v201_v28 = vld [vmem:[#allocation5 + $0x358] sm:$0xff] }
  0x9b   :  { %774 = vmatpush.msrb.mxu2 %v228_v39  ;;  %v261_v29 = vld [vmem:[#allocation5 + $0x538] sm:$0xff] }
  0x9c   :  { %733 = vmatpush.msra.mxu1 %v164_v40  ;;  %v325_v39 = vld [vmem:[#allocation5 + $0x738] sm:$0xff] }
  0x9d   :  { %545 = vmatmul.f32.gmra.mxu0 %v1601_v44  ;;  %v292_v44 = vld [vmem:[#allocation5 + $0x630] sm:$0xff]  ;;  %775 = vmatpush.msrb.mxu2 %v224_v42  ;;  %v133_v42 = vld [vmem:[#allocation5 + $0x138] sm:$0xff] }
  0x9e   :  { %586 = vmatmul.f32.gmra.mxu1 %v1603_v45  ;;  %815 = vmatpush.msrb.mxu3 %v292_v44  ;;  %v100_v45 = vld [vmem:[#allocation5 + $0x30] sm:$0xff] }
  0x9f   :  { %615 = vmatmul.f32.gmra.mxu2 %v1643_v30  ;;  %692 = vmatpush.msra.mxu0 %v100_v45 }
  0xa0   :  { %656 = vmatmul.f32.gmra.mxu3 %v1645_v31  ;;  %734 = vmatpush.msra.mxu1 %v160_v47 }
  0xa1   :  { %816 = vmatpush.msrb.mxu3 %v288_v43  ;;  %693 = vmatpush.msra.mxu0 %v96_v46  ;;  %v197_v43 = vld [vmem:[#allocation5 + $0x338] sm:$0xff] }
  0xa2   :  { %883 = vmatpush.msrb.mxu1 %v221_v58  ;;  %v257_v46 = vld [vmem:[#allocation5 + $0x518] sm:$0xff] }
  0xa3   :  { %842 = vmatpush.msrb.mxu0 %v157_v53  ;;  %v317_v53 = vld [vmem:[#allocation5 + $0x6f8] sm:$0xff] }
  0xa4   :  { %884 = vmatpush.msrb.mxu1 %v217_v2 }
  0xa5   :  { %548 = vmatmul.f32.gmra.mxu0 %v1613_v56  ;;  %v285_v56 = vld [vmem:[#allocation5 + $0x5f8] sm:$0xff] }
  0xa6   :  { %589 = vmatmul.f32.gmra.mxu1 %v1615_v57  ;;  %v349_v57 = vld [vmem:[#allocation5 + $0x7f8] sm:$0xff]  ;;  %924 = vmatpush.msra.mxu2 %v285_v56 }
  0xa7   :  { %618 = vmatmul.f32.gmra.mxu2 %v1649_v54  ;;  %965 = vmatpush.msra.mxu3 %v349_v57  ;;  %v321_v56 = vld [vmem:[#allocation5 + $0x718] sm:$0xff] }
  0xa8   :  { %659 = vmatmul.f32.gmra.mxu3 %v1651_v55  ;;  %925 = vmatpush.msra.mxu2 %v281_v59  ;;  %v129_v57 = vld [vmem:[#allocation5 + $0x118] sm:$0xff] }
  0xa9   :  { %966 = vmatpush.msra.mxu3 %v345_v0  ;;  %843 = vmatpush.msrb.mxu0 %v153_v1  ;;  %v189_v0 = vld [vmem:[#allocation5 + $0x2f8] sm:$0xff] }
  0xaa   :  { %885 = vmatpush.msrb.mxu1 %v213_v9  ;;  %v249_v1 = vld [vmem:[#allocation5 + $0x4d8] sm:$0xff] }
  0xab   :  { %844 = vmatpush.msrb.mxu0 %v149_v8 }
  0xad   :  { %551 = vmatmul.f32.gmra.mxu0 %v1625_v4  ;;  %v277_v4 = vld [vmem:[#allocation5 + $0x5b8] sm:$0xff] }
  0xae   :  { %592 = vmatmul.f32.gmra.mxu1 %v1627_v5  ;;  %v341_v5 = vld [vmem:[#allocation5 + $0x7b8] sm:$0xff]  ;;  %926 = vmatpush.msra.mxu2 %v277_v4  ;;  %v408_v27 = vpop.f32.mrf.mxu1 }
  0xaf   :  { %621 = vmatmul.f32.gmra.mxu2 %v1655_v14  ;;  %967 = vmatpush.msra.mxu3 %v341_v5  ;;  %v185_v5 = vld [vmem:[#allocation5 + $0x2d8] sm:$0xff] }
  0xb0   :  { %662 = vmatmul.f32.gmra.mxu3 %v1657_v15  ;;  %927 = vmatpush.msra.mxu2 %v273_v12  ;;  %v1739_v12 = vld [vmem:[#allocation2 + $0x80] sm:$0xff] }
  0xb1   :  { %845 = vmatpush.msrb.mxu0 %v145_v13 }
  0xb2   :  { %928 = vmatpush.msra.mxu2 %v269_v18  ;;  %v367_v26 = vpop.f32.mrf.mxu0  ;;  %v181_v18 = vld [vmem:[#allocation5 + $0x2b8] sm:$0xff] }
  0xb3   :  { %v379_v48 = vpop.f32.mrf.mxu2  ;;  %v420_v49 = vpop.f32.mrf.mxu3  ;;  %846 = vmatpush.msrb.mxu0 %v141_v32  ;;  %v409_v47 = vadd.f32 %v408_v27, %v367_v26  ;;  %v305_v32 = vld [vmem:[#allocation5 + $0x698] sm:$0xff] }
  0xb4   :  { %v1711_v52 = vadd.f32 %v420_v49, %v379_v48  ;;  %929 = vmatpush.msra.mxu2 %v265_v25  ;;  %v193_v48 = vld [vmem:[#allocation5 + $0x318] sm:$0xff] }
  0xb5   :  { %694 = vmatmul.f32.vlgmr.msra.gmra.mxu0 %v1595_v38  ;;  %v337_v38 = vld [vmem:[#allocation5 + $0x798] sm:$0xff] }
  0xb6   :  { %735 = vmatmul.f32.vlgmr.msra.gmra.mxu1 %v1597_v41  ;;  %v209_v41 = vld [vmem:[#allocation5 + $0x398] sm:$0xff]  ;;  %968 = vmatpush.msra.mxu3 %v337_v38  ;;  %v1742_v38 = vld [vmem:[#allocation2 + $0x88] sm:$0xff] }
  0xb7   :  { %624 = vmatmul.f32.gmra.mxu2 %v1661_v36  ;;  %886 = vmatpush.msrb.mxu1 %v209_v41  ;;  %v253_v49 = vld [vmem:[#allocation5 + $0x4f8] sm:$0xff] }
  0xb8   :  { %665 = vmatmul.f32.gmra.mxu3 %v1663_v37  ;;  %930 = vmatpush.msra.mxu2 %v261_v29  ;;  %v117_v41 = vld [vmem:[#allocation5 + $0xb8] sm:$0xff] }
  0xb9   :  { %969 = vmatpush.msra.mxu3 %v333_v19  ;;  %887 = vmatpush.msrb.mxu1 %v205_v33  ;;  %v241_v19 = vld [vmem:[#allocation5 + $0x498] sm:$0xff] }
  0xba   :  { %931 = vmatpush.msra.mxu2 %v257_v46  ;;  %v113_v33 = vld [vmem:[#allocation5 + $0x98] sm:$0xff] }
  0xbb   :  { %v423_v6 = vpop.f32.mrf.mxu3  ;;  %888 = vmatpush.msrb.mxu1 %v201_v28  ;;  %v177_v25 = vld [vmem:[#allocation5 + $0x298] sm:$0xff] }
  0xbc   :  { %932 = vmatpush.msra.mxu2 %v253_v49  ;;  %v237_v26 = vld [vmem:[#allocation5 + $0x478] sm:$0xff]  ;;  %v1762_v49 = vld [vmem:[#allocation2 + $0xc8] sm:$0xff] }
  0xbd   :  { %v382_v3 = vpop.f32.mrf.mxu2  ;;  %697 = vmatmul.f32.gmra.mxu0 %v1607_v50  ;;  %v329_v50 = vld [vmem:[#allocation5 + $0x758] sm:$0xff]  ;;  %889 = vmatpush.msrb.mxu1 %v197_v43 }
  0xbe   :  { %v1717_v7 = vadd.f32 %v423_v6, %v382_v3  ;;  %738 = vmatmul.f32.gmra.mxu1 %v1609_v51  ;;  %v137_v51 = vld [vmem:[#allocation5 + $0x158] sm:$0xff]  ;;  %970 = vmatpush.msra.mxu3 %v329_v50  ;;  %v1749_v50 = vld [vmem:[#allocation2 + $0xa0] sm:$0xff] }
  0xbf   :  { %627 = vmatmul.f32.gmra.mxu2 %v1667_v60  ;;  %847 = vmatpush.msrb.mxu0 %v137_v51  ;;  %v245_v3 = vld [vmem:[#allocation5 + $0x4b8] sm:$0xff]  ;;  %v1752_v51 = vld [vmem:[#allocation2 + $0xa8] sm:$0xff] }
  0xc0   :  { %668 = vmatmul.f32.gmra.mxu3 %v1669_v61  ;;  %890 = vmatpush.msrb.mxu1 %v193_v48  ;;  %v309_v6 = vld [vmem:[#allocation5 + $0x6b8] sm:$0xff]  ;;  %v1759_v48 = vld [vmem:[#allocation2 + $0xc0] sm:$0xff] }
  0xc1   :  { %971 = vmatpush.msra.mxu3 %v325_v39  ;;  %848 = vmatpush.msrb.mxu0 %v133_v42  ;;  %v301_v27 = vld [vmem:[#allocation5 + $0x678] sm:$0xff] }
  0xc2   :  { %891 = vmatpush.msrb.mxu1 %v189_v0  ;;  %933 = vmatpush.msra.mxu2 %v249_v1  ;;  %v109_v29 = vld [vmem:[#allocation5 + $0x78] sm:$0xff] }
  0xc3   :  { %v426_v23 = vpop.f32.mrf.mxu3  ;;  %972 = vmatpush.msra.mxu3 %v321_v56  ;;  %849 = vmatpush.msrb.mxu0 %v129_v57  ;;  %v173_v39 = vld [vmem:[#allocation5 + $0x278] sm:$0xff] }
  0xc4   :  { %892 = vmatpush.msrb.mxu1 %v185_v5  ;;  %934 = vmatpush.msra.mxu2 %v245_v3  ;;  %v229_v56 = vld [vmem:[#allocation5 + $0x438] sm:$0xff]  ;;  %v1769_v5 = vld [vmem:[#allocation2 + $0xe0] sm:$0xff]  ;;  %v1772_v3 = vld [vmem:[#allocation2 + $0xe8] sm:$0xff] }
  0xc5   :  { %700 = vmatmul.f32.gmra.mxu0 %v1619_v62  ;;  %v370_v62 = vpop.f32.mrf.mxu0  ;;  %973 = vmatpush.msra.mxu3 %v317_v53  ;;  %v293_v57 = vld [vmem:[#allocation5 + $0x638] sm:$0xff] }
  0xc6   :  { %741 = vmatmul.f32.gmra.mxu1 %v1621_v63  ;;  %v411_v63 = vpop.f32.mrf.mxu1  ;;  %935 = vmatpush.msra.mxu2 %v241_v19  ;;  %v225_v0 = vld [vmem:[#allocation5 + $0x418] sm:$0xff] }
  0xc7   :  { %630 = vmatmul.f32.gmra.mxu2 %v1675_v20  ;;  %v385_v22 = vpop.f32.mrf.mxu2  ;;  %v412_v4 = vadd.f32 %v411_v63, %v370_v62  ;;  %893 = vmatpush.msrb.mxu1 %v181_v18  ;;  %v105_v62 = vld [vmem:[#allocation5 + $0x58] sm:$0xff]  ;;  %v1431_v18 = vld [vmem:[#allocation2 + $0x8] sm:$0xff] }
  0xc8   :  { %671 = vmatmul.f32.gmra.mxu3 %v1677_v21  ;;  %v1723_v24 = vadd.f32 %v426_v23, %v385_v22  ;;  %936 = vmatpush.msra.mxu2 %v237_v26  ;;  %v169_v63 = vld [vmem:[#allocation5 + $0x258] sm:$0xff]  ;;  %v1432_v26 = vld [vmem:[#allocation2 + $0x20] sm:$0xff] }
  0xc9   :  { %894 = vmatpush.msrb.mxu1 %v177_v25 }
  0xcb   :  { %895 = vmatpush.msrb.mxu1 %v173_v39 }
  0xcc   :  { %v429_v45 = vpop.f32.mrf.mxu3 }
  0xcd   :  { %703 = vmatmul.f32.gmra.mxu0 %v1631_v10  ;;  %v313_v10 = vld [vmem:[#allocation5 + $0x6d8] sm:$0xff]  ;;  %v373_v8 = vpop.f32.mrf.mxu0  ;;  %896 = vmatpush.msrb.mxu1 %v169_v63 }
  0xce   :  { %744 = vmatmul.f32.gmra.mxu1 %v1633_v11  ;;  %v121_v11 = vld [vmem:[#allocation5 + $0xd8] sm:$0xff]  ;;  %974 = vmatpush.msra.mxu3 %v313_v10  ;;  %v414_v9 = vpop.f32.mrf.mxu1 }
  0xcf   :  { %633 = vmatmul.f32.gmra.mxu2 %v1683_v34  ;;  %v415_v23 = vadd.f32 %v414_v9, %v373_v8  ;;  %v97_v10 = vld [vmem:[#allocation5 + $0x18] sm:$0xff] }
  0xd0   :  { %674 = vmatmul.f32.gmra.mxu3 %v1685_v35 }
  0xd1   :  { %v388_v44 = vpop.f32.mrf.mxu2  ;;  %975 = vmatpush.msra.mxu3 %v309_v6 }
  0xd2   :  { %v1729_v40 = vadd.f32 %v429_v45, %v388_v44  ;;  %v233_v44 = vld [vmem:[#allocation5 + $0x458] sm:$0xff] }
  0xd3   :  { %976 = vmatpush.msra.mxu3 %v305_v32  ;;  %937 = vmatpush.msra.mxu2 %v233_v44  ;;  %v1434_v44 = vld [vmem:[#allocation2 + $0x40] sm:$0xff] }
  0xd5   :  { %706 = vmatmul.f32.gmra.mxu0 %v1739_v12  ;;  %977 = vmatpush.msra.mxu3 %v301_v27  ;;  %v376_v45 = vpop.f32.mrf.mxu0  ;;  %v1433_v27 = vld [vmem:[#allocation2 + $0x28] sm:$0xff] }
  0xd6   :  { %747 = vmatmul.f32.gmra.mxu1 %v1742_v38  ;;  %v417_v42 = vpop.f32.mrf.mxu1  ;;  %938 = vmatpush.msra.mxu2 %v229_v56  ;;  %v1436_v56 = vld [vmem:[#allocation2 + $0x10] sm:$0xff] }
  0xd7   :  { %776 = vmatmul.f32.vlgmr.msrb.gmra.mxu2 %v1637_v16  ;;  %v418_v46 = vadd.f32 %v417_v42, %v376_v45  ;;  %v1435_v45 = vld [vmem:[#allocation2 + $0x48] sm:$0xff] }
  0xd8   :  { %817 = vmatmul.f32.vlgmr.msrb.gmra.mxu3 %v1639_v17  ;;  %v125_v17 = vld [vmem:[#allocation5 + $0xf8] sm:$0xff]  ;;  %939 = vmatpush.msra.mxu2 %v225_v0 }
  0xd9   :  { %850 = vmatpush.msrb.mxu0 %v125_v17  ;;  %v165_v17 = vld [vmem:[#allocation5 + $0x238] sm:$0xff] }
  0xda   :  { %v449_v58 = vpop.f32.mrf.mxu2  ;;  %897 = vmatpush.msrb.mxu1 %v165_v17 }
  0xdb   :  { %v490_v59 = vpop.f32.mrf.mxu3  ;;  %v450_v16 = vadd.f32 %v449_v58, %v409_v47  ;;  %851 = vmatpush.msrb.mxu0 %v121_v11  ;;  %v297_v47 = vld [vmem:[#allocation5 + $0x658] sm:$0xff] }
  0xdc   :  { %978 = vmatpush.msra.mxu3 %v297_v47  ;;  %v161_v11 = vld [vmem:[#allocation5 + $0x218] sm:$0xff] }
  0xdd   :  { %v1735_v2 = vadd.f32 %v490_v59, %v450_v16  ;;  %852 = vmatpush.msrb.mxu0 %v117_v41  ;;  %v101_v16 = vld [vmem:[#allocation5 + $0x38] sm:$0xff]  ;;  %898 = vmatpush.msrb.mxu1 %v161_v11  ;;  %v1430_v41 = vld [vmem:[#allocation2] sm:$0xff]  ;;  %v1440_v11 = vld [vmem:[#allocation2 + $0x30] sm:$0xff] }
  0xde   :  { %709 = vmatmul.f32.gmra.mxu0 %v1749_v50  ;;  %750 = vmatmul.f32.gmra.mxu1 %v1752_v51 }
  0xdf   :  { %779 = vmatmul.f32.gmra.mxu2 %v1643_v30  ;;  %853 = vmatpush.msrb.mxu0 %v113_v33 }
  0xe0   :  { %820 = vmatmul.f32.gmra.mxu3 %v1645_v31 }
  0xe1   :  { %854 = vmatpush.msrb.mxu0 %v109_v29  ;;  %979 = vmatpush.msra.mxu3 %v293_v57 }
  0xe2   :  { %v452_v30 = vpop.f32.mrf.mxu2 }
  0xe3   :  { %v493_v13 = vpop.f32.mrf.mxu3  ;;  %v453_v31 = vadd.f32 %v452_v30, %v412_v4  ;;  %855 = vmatpush.msrb.mxu0 %v105_v62  ;;  %v289_v4 = vld [vmem:[#allocation5 + $0x618] sm:$0xff] }
  0xe4   :  { %980 = vmatpush.msra.mxu3 %v289_v4 }
  0xe5   :  { %v1745_v22 = vadd.f32 %v493_v13, %v453_v31  ;;  %856 = vmatpush.msrb.mxu0 %v101_v16 }
  0xe6   :  { %712 = vmatmul.f32.gmra.mxu0 %v1759_v48  ;;  %753 = vmatmul.f32.gmra.mxu1 %v1762_v49 }
  0xe7   :  { %782 = vmatmul.f32.gmra.mxu2 %v1649_v54  ;;  %857 = vmatpush.msrb.mxu0 %v97_v10 }
  0xe8   :  { %823 = vmatmul.f32.gmra.mxu3 %v1651_v55 }
  0xea   :  { %v455_v28 = vpop.f32.mrf.mxu2 }
  0xeb   :  { %v496_v54 = vpop.f32.mrf.mxu3  ;;  %v456_v55 = vadd.f32 %v455_v28, %v415_v23 }
  0xed   :  { %v1755_v43 = vadd.f32 %v496_v54, %v456_v55 }
  0xee   :  { %715 = vmatmul.f32.gmra.mxu0 %v1769_v5  ;;  %756 = vmatmul.f32.gmra.mxu1 %v1772_v3  ;;  %v531_v13 = vpop.f32.mrf.mxu0 }
  0xef   :  { %785 = vmatmul.f32.gmra.mxu2 %v1655_v14  ;;  %v572_v31 = vpop.f32.mrf.mxu1 }
  0xf0   :  { %826 = vmatmul.f32.gmra.mxu3 %v1657_v15  ;;  %v573_v57 = vadd.f32 %v572_v31, %v531_v13 }
  0xf2   :  { %v458_v53 = vpop.f32.mrf.mxu2 }
  0xf3   :  { %v499_v58 = vpop.f32.mrf.mxu3  ;;  %v459_v59 = vadd.f32 %v458_v53, %v418_v46  ;;  %v1437_v53 = vld [vmem:[#allocation2 + $0x18] sm:$0xff] }
  0xf5   :  { %v1765_v1 = vadd.f32 %v499_v58, %v459_v59  ;;  %v1438_v58 = vld [vmem:[#allocation2 + $0x60] sm:$0xff]  ;;  %v1439_v59 = vld [vmem:[#allocation2 + $0x68] sm:$0xff] }
  0xf6   :  { %858 = vmatmul.f32.vlgmr.msrb.gmra.mxu0 %v1430_v41  ;;  %899 = vmatmul.f32.vlgmr.msrb.gmra.mxu1 %v1431_v18  ;;  %v1069_v41 = vld [vmem:[#allocation7 + $0x78] sm:$0xff] }
  0xf7   :  { %788 = vmatmul.f32.gmra.mxu2 %v1661_v36  ;;  %1086 = vmatpush.msra.mxu0 %v1069_v41 }
  0xf8   :  { %829 = vmatmul.f32.gmra.mxu3 %v1663_v37 }
  0xfa   :  { %v461_v6 = vpop.f32.mrf.mxu2  ;;  %v534_v25 = vpop.f32.mrf.mxu0 }
  0xfb   :  { %v502_v8 = vpop.f32.mrf.mxu3  ;;  %v462_v9 = vadd.f32 %v461_v6, %v1711_v52  ;;  %v575_v52 = vpop.f32.mrf.mxu1 }
  0xfc   :  { %v576_v6 = vadd.f32 %v575_v52, %v534_v25  ;;  %v1443_v52 = vld [vmem:[#allocation2 + $0x58] sm:$0xff] }
  0xfd   :  { %v1776_v30 = vadd.f32 %v502_v8, %v462_v9  ;;  %v1441_v8 = vld [vmem:[#allocation2 + $0x38] sm:$0xff] }
  0xfe   :  { %861 = vmatmul.f32.gmra.mxu0 %v1432_v26  ;;  %902 = vmatmul.f32.gmra.mxu1 %v1433_v27  ;;  %v1442_v26 = vld [vmem:[#allocation2 + $0x50] sm:$0xff] }
  0xff   :  { %791 = vmatmul.f32.gmra.mxu2 %v1667_v60 }
 0x100   :  { %832 = vmatmul.f32.gmra.mxu3 %v1669_v61 }
 0x102   :  { %v464_v19 = vpop.f32.mrf.mxu2  ;;  %v537_v39 = vpop.f32.mrf.mxu0 }
 0x103   :  { %v505_v23 = vpop.f32.mrf.mxu3  ;;  %v465_v32 = vadd.f32 %v464_v19, %v1717_v7  ;;  %v578_v7 = vpop.f32.mrf.mxu1  ;;  %v1068_v19 = vld [vmem:[#allocation7 + $0x70] sm:$0xff] }
 0x104   :  { %1087 = vmatpush.msra.mxu0 %v1068_v19  ;;  %v579_v25 = vadd.f32 %v578_v7, %v537_v39  ;;  %v1084_v19 = vld [vmem:[#allocation7 + $0xf0] sm:$0xff] }
 0x105   :  { %v1781_v33 = vadd.f32 %v505_v23, %v465_v32 }
 0x106   :  { %864 = vmatmul.f32.gmra.mxu0 %v1434_v44  ;;  %905 = vmatmul.f32.gmra.mxu1 %v1435_v45  ;;  %v1064_v45 = vld [vmem:[#allocation7 + $0x50] sm:$0xff] }
 0x107   :  { %794 = vmatmul.f32.gmra.mxu2 %v1675_v20 }
 0x108   :  { %835 = vmatmul.f32.gmra.mxu3 %v1677_v21 }
 0x10a   :  { %v467_v28 = vpop.f32.mrf.mxu2  ;;  %v540_v63 = vpop.f32.mrf.mxu0 }
 0x10b   :  { %v508_v54 = vpop.f32.mrf.mxu3  ;;  %v468_v55 = vadd.f32 %v467_v28, %v1723_v24  ;;  %v581_v24 = vpop.f32.mrf.mxu1 }
 0x10c   :  { %v582_v7 = vadd.f32 %v581_v24, %v540_v63 }
 0x10d   :  { %v1786_v29 = vadd.f32 %v508_v54, %v468_v55  ;;  %v1065_v55 = vld [vmem:[#allocation7 + $0x58] sm:$0xff] }
 0x10e   :  { %867 = vmatmul.f32.gmra.mxu0 %v1438_v58  ;;  %908 = vmatmul.f32.gmra.mxu1 %v1439_v59  ;;  %v1060_v58 = vld [vmem:[#allocation7 + $0x30] sm:$0xff] }
 0x10f   :  { %797 = vmatmul.f32.gmra.mxu2 %v1683_v34 }
 0x110   :  { %838 = vmatmul.f32.gmra.mxu3 %v1685_v35 }
 0x112   :  { %v470_v42 = vpop.f32.mrf.mxu2  ;;  %v543_v10 = vpop.f32.mrf.mxu0 }
 0x113   :  { %v511_v46 = vpop.f32.mrf.mxu3  ;;  %v471_v47 = vadd.f32 %v470_v42, %v1729_v40  ;;  %v584_v40 = vpop.f32.mrf.mxu1 }
 0x115   :  { %v1791_v62 = vadd.f32 %v511_v46, %v471_v47 }
 0x116   :  { %870 = vmatmul.f32.gmra.mxu0 %v1739_v12  ;;  %911 = vmatmul.f32.gmra.mxu1 %v1742_v38  ;;  %v1067_v12 = vld [vmem:[#allocation7 + $0x68] sm:$0xff]  ;;  %v1066_v38 = vld [vmem:[#allocation7 + $0x60] sm:$0xff] }
 0x117   :  { %940 = vmatmul.f32.vlgmr.msra.gmra.mxu2 %v1436_v56  ;;  %1088 = vmatpush.msra.mxu0 %v1067_v12 }
 0x118   :  { %981 = vmatmul.f32.vlgmr.msra.gmra.mxu3 %v1437_v53 }
 0x119   :  { %1089 = vmatpush.msra.mxu0 %v1066_v38 }
 0x11a   :  { %v613_v16 = vpop.f32.mrf.mxu2  ;;  %v1799_v23 = vpop.f32.mrf.mxu0 }
 0x11b   :  { %v654_v17 = vpop.f32.mrf.mxu3  ;;  %v614_v0 = vadd.f32 %v613_v16, %v573_v57  ;;  %v587_v32 = vpop.f32.mrf.mxu1  ;;  %1090 = vmatpush.msra.mxu0 %v1065_v55  ;;  %v1061_v57 = vld [vmem:[#allocation7 + $0x38] sm:$0xff] }
 0x11d   :  { %v1793_v4 = vadd.f32 %v654_v17, %v614_v0  ;;  %1091 = vmatpush.msra.mxu0 %v1064_v45  ;;  %v1057_v17 = vld [vmem:[#allocation7 + $0x18] sm:$0xff] }
 0x11e   :  { %873 = vmatmul.f32.gmra.mxu0 %v1749_v50  ;;  %914 = vmatmul.f32.gmra.mxu1 %v1752_v51  ;;  %v1063_v50 = vld [vmem:[#allocation7 + $0x48] sm:$0xff]  ;;  %v1062_v51 = vld [vmem:[#allocation7 + $0x40] sm:$0xff] }
 0x11f   :  { %943 = vmatmul.f32.gmra.mxu2 %v1440_v11  ;;  %1092 = vmatpush.msra.mxu0 %v1063_v50  ;;  %v1056_v11 = vld [vmem:[#allocation7 + $0x10] sm:$0xff] }
 0x120   :  { %984 = vmatmul.f32.gmra.mxu3 %v1441_v8 }
 0x121   :  { %1093 = vmatpush.msra.mxu0 %v1062_v51 }
 0x122   :  { %v616_v9 = vpop.f32.mrf.mxu2  ;;  %v549_v42 = vpop.f32.mrf.mxu0 }
 0x123   :  { %v657_v13 = vpop.f32.mrf.mxu3  ;;  %v617_v31 = vadd.f32 %v616_v9, %v576_v6  ;;  %v590_v39 = vpop.f32.mrf.mxu1  ;;  %1094 = vmatpush.msra.mxu0 %v1061_v57  ;;  %v1085_v9 = vld [vmem:[#allocation7 + $0xf8] sm:$0xff]  ;;  %v1006_v57 = vmul.f32 %v1735_v2, %v1735_v2 }
 0x124   :  { %1127 = vmatpush.msra.mxu1 %v1085_v9 }
 0x125   :  { %v1797_v18 = vadd.f32 %v657_v13, %v617_v31  ;;  %1095 = vmatpush.msra.mxu0 %v1060_v58 }
 0x126   :  { %876 = vmatmul.f32.gmra.mxu0 %v1759_v48  ;;  %917 = vmatmul.f32.gmra.mxu1 %v1762_v49  ;;  %v1059_v48 = vld [vmem:[#allocation7 + $0x28] sm:$0xff]  ;;  %v1058_v49 = vld [vmem:[#allocation7 + $0x20] sm:$0xff] }
 0x127   :  { %946 = vmatmul.f32.gmra.mxu2 %v1442_v26  ;;  %1096 = vmatpush.msra.mxu0 %v1059_v48  ;;  %v1083_v26 = vld [vmem:[#allocation7 + $0xe8] sm:$0xff] }
 0x128   :  { %987 = vmatmul.f32.gmra.mxu3 %v1443_v52  ;;  %1128 = vmatpush.msra.mxu1 %v1084_v19 }
 0x129   :  { %1097 = vmatpush.msra.mxu0 %v1058_v49 }
 0x12a   :  { %v619_v27 = vpop.f32.mrf.mxu2  ;;  %1129 = vmatpush.msra.mxu1 %v1083_v26 }
 0x12b   :  { %v660_v28 = vpop.f32.mrf.mxu3  ;;  %v620_v54 = vadd.f32 %v619_v27, %v579_v25  ;;  %v593_v63 = vpop.f32.mrf.mxu1  ;;  %1098 = vmatpush.msra.mxu0 %v1057_v17  ;;  %v1008_v17 = vmul.f32 %v1745_v22, %v1745_v22 }
 0x12d   :  { %v1803_v44 = vadd.f32 %v660_v28, %v620_v54  ;;  %1099 = vmatpush.msra.mxu0 %v1056_v11  ;;  %v1081_v54 = vld [vmem:[#allocation7 + $0xd8] sm:$0xff] }
 0x12e   :  { %879 = vmatmul.f32.gmra.mxu0 %v1769_v5  ;;  %920 = vmatmul.f32.gmra.mxu1 %v1772_v3  ;;  %v1055_v5 = vld [vmem:[#allocation7 + $0x8] sm:$0xff]  ;;  %v1054_v3 = vld [vmem:[#allocation7] sm:$0xff] }
 0x12f   :  { %949 = vmatmul.f32.gmra.mxu2 %v1655_v14  ;;  %v552_v14 = vpop.f32.mrf.mxu0  ;;  %1100 = vmatpush.msra.mxu0 %v1055_v5  ;;  %v1076_v5 = vld [vmem:[#allocation7 + $0xb0] sm:$0xff] }
 0x130   :  { %990 = vmatmul.f32.gmra.mxu3 %v1657_v15  ;;  %v585_v15 = vadd.f32 %v584_v40, %v543_v10  ;;  %v594_v38 = vadd.f32 %v593_v63, %v552_v14 }
 0x131   :  { %1101 = vmatpush.msra.mxu0 %v1054_v3 }
 0x132   :  { %v622_v46 = vpop.f32.mrf.mxu2 }
 0x133   :  { %v663_v47 = vpop.f32.mrf.mxu3  ;;  %v623_v56 = vadd.f32 %v622_v46, %v582_v7  ;;  %v736_v10 = vpop.f32.mrf.mxu1  ;;  %v1080_v7 = vld [vmem:[#allocation7 + $0xd0] sm:$0xff]  ;;  %v1079_v46 = vld [vmem:[#allocation7 + $0xc8] sm:$0xff] }
 0x135   :  { %v1809_v53 = vadd.f32 %v663_v47, %v623_v56 }
 0x137   :  { %952 = vmatmul.f32.gmra.mxu2 %v1661_v36  ;;  %v695_v36 = vpop.f32.mrf.mxu0 }
 0x138   :  { %993 = vmatmul.f32.gmra.mxu3 %v1663_v37  ;;  %v588_v37 = vadd.f32 %v587_v32, %v1799_v23 }
 0x13a   :  { %v625_v24 = vpop.f32.mrf.mxu2 }
 0x13b   :  { %v666_v59 = vpop.f32.mrf.mxu3  ;;  %v626_v16 = vadd.f32 %v625_v24, %v585_v15  ;;  %v739_v41 = vpop.f32.mrf.mxu1  ;;  %v1078_v15 = vld [vmem:[#allocation7 + $0xc0] sm:$0xff] }
 0x13d   :  { %v1815_v0 = vadd.f32 %v666_v59, %v626_v16  ;;  %v1077_v59 = vld [vmem:[#allocation7 + $0xb8] sm:$0xff] }
 0x13f   :  { %955 = vmatmul.f32.gmra.mxu2 %v1667_v60  ;;  %v698_v31 = vpop.f32.mrf.mxu0  ;;  %v591_v60 = vadd.f32 %v590_v39, %v549_v42  ;;  %v737_v39 = vadd.f32 %v736_v10, %v695_v36 }
 0x140   :  { %996 = vmatmul.f32.gmra.mxu3 %v1669_v61  ;;  %v740_v14 = vadd.f32 %v739_v41, %v698_v31  ;;  %v1010_v31 = vmul.f32 %v1755_v43, %v1755_v43 }
 0x142   :  { %v628_v40 = vpop.f32.mrf.mxu2 }
 0x143   :  { %v669_v6 = vpop.f32.mrf.mxu3  ;;  %v629_v8 = vadd.f32 %v628_v40, %v588_v37  ;;  %v742_v12 = vpop.f32.mrf.mxu1 }
 0x145   :  { %v1820_v13 = vadd.f32 %v669_v6, %v629_v8  ;;  %v1075_v8 = vld [vmem:[#allocation7 + $0xa8] sm:$0xff] }
 0x147   :  { %958 = vmatmul.f32.gmra.mxu2 %v1675_v20  ;;  %v701_v52 = vpop.f32.mrf.mxu0  ;;  %v1082_v20 = vld [vmem:[#allocation7 + $0xe0] sm:$0xff] }
 0x148   :  { %999 = vmatmul.f32.gmra.mxu3 %v1677_v21  ;;  %1130 = vmatpush.msra.mxu1 %v1082_v20  ;;  %v743_v36 = vadd.f32 %v742_v12, %v701_v52  ;;  %v1073_v12 = vld [vmem:[#allocation7 + $0x98] sm:$0xff]  ;;  %v1012_v20 = vmul.f32 %v1765_v1, %v1765_v1 }
 0x14a   :  { %v631_v61 = vpop.f32.mrf.mxu2  ;;  %1131 = vmatpush.msra.mxu1 %v1081_v54 }
 0x14b   :  { %v672_v23 = vpop.f32.mrf.mxu3  ;;  %v632_v32 = vadd.f32 %v631_v61, %v591_v60  ;;  %v745_v42 = vpop.f32.mrf.mxu1 }
 0x14c   :  { %1132 = vmatpush.msra.mxu1 %v1080_v7 }
 0x14d   :  { %v1824_v25 = vadd.f32 %v672_v23, %v632_v32  ;;  %v1074_v23 = vld [vmem:[#allocation7 + $0xa0] sm:$0xff] }
 0x14e   :  { %1133 = vmatpush.msra.mxu1 %v1079_v46 }
 0x14f   :  { %961 = vmatmul.f32.gmra.mxu2 %v1683_v34  ;;  %v704_v45 = vpop.f32.mrf.mxu0 }
 0x150   :  { %1002 = vmatmul.f32.gmra.mxu3 %v1685_v35  ;;  %1134 = vmatpush.msra.mxu1 %v1078_v15  ;;  %v746_v60 = vadd.f32 %v745_v42, %v704_v45 }
 0x152   :  { %v634_v27 = vpop.f32.mrf.mxu2  ;;  %1135 = vmatpush.msra.mxu1 %v1077_v59 }
 0x153   :  { %v675_v28 = vpop.f32.mrf.mxu3  ;;  %v635_v21 = vadd.f32 %v634_v27, %v594_v38  ;;  %v748_v56 = vpop.f32.mrf.mxu1 }
 0x154   :  { %1136 = vmatpush.msra.mxu1 %v1076_v5 }
 0x155   :  { %v1828_v55 = vadd.f32 %v675_v28, %v635_v21  ;;  %v1072_v21 = vld [vmem:[#allocation7 + $0x90] sm:$0xff] }
 0x156   :  { %1137 = vmatpush.msra.mxu1 %v1075_v8 }
 0x157   :  { %v707_v47 = vpop.f32.mrf.mxu0 }
 0x158   :  { %1138 = vmatpush.msra.mxu1 %v1074_v23  ;;  %v749_v28 = vadd.f32 %v748_v56, %v707_v47 }
 0x15a   :  { %v777_v50 = vpop.f32.mrf.mxu2  ;;  %1139 = vmatpush.msra.mxu1 %v1073_v12 }
 0x15b   :  { %v818_v51 = vpop.f32.mrf.mxu3  ;;  %v778_v34 = vadd.f32 %v777_v50, %v737_v39  ;;  %v751_v37 = vpop.f32.mrf.mxu1  ;;  %v1071_v50 = vld [vmem:[#allocation7 + $0x88] sm:$0xff] }
 0x15c   :  { %1140 = vmatpush.msra.mxu1 %v1072_v21 }
 0x15d   :  { %v819_v35 = vadd.f32 %v818_v51, %v778_v34  ;;  %v1014_v34 = vmul.f32 %v1776_v30, %v1776_v30 }
 0x15e   :  { %1141 = vmatpush.msra.mxu1 %v1071_v50 }
 0x15f   :  { %v1022_v58 = vmul.f32 %v819_v35, %v819_v35  ;;  %v710_v10 = vpop.f32.mrf.mxu0 }
 0x160   :  { %v752_v35 = vadd.f32 %v751_v37, %v710_v10 }
 0x161   :  { %v1038_v63 = vadd.f32 %v1022_v58, %v1006_v57  ;;  %v1070_v57 = vld [vmem:[#allocation7 + $0x80] sm:$0xff] }
 0x162   :  { %v780_v48 = vpop.f32.mrf.mxu2  ;;  %1142 = vmatpush.msra.mxu1 %v1070_v57 }
 0x163   :  { %v821_v49 = vpop.f32.mrf.mxu3  ;;  %v781_v24 = vadd.f32 %v780_v48, %v740_v14  ;;  %1102 = vmatmul.f32.vlgmr.msra.gmra.mxu0 %v1038_v63  ;;  %v754_v61 = vpop.f32.mrf.mxu1  ;;  %v1016_v48 = vmul.f32 %v1781_v33, %v1781_v33 }
 0x165   :  { %v822_v16 = vadd.f32 %v821_v49, %v781_v24 }
 0x167   :  { %v1024_v11 = vmul.f32 %v822_v16, %v822_v16  ;;  %v713_v19 = vpop.f32.mrf.mxu0 }
 0x168   :  { %v755_v24 = vadd.f32 %v754_v61, %v713_v19 }
 0x169   :  { %v1040_v2 = vadd.f32 %v1024_v11, %v1008_v17 }
 0x16a   :  { %v783_v3 = vpop.f32.mrf.mxu2 }
 0x16b   :  { %v824_v40 = vpop.f32.mrf.mxu3  ;;  %v784_v6 = vadd.f32 %v783_v3, %v743_v36  ;;  %1105 = vmatmul.f32.gmra.mxu0 %v1040_v2  ;;  %v757_v7 = vpop.f32.mrf.mxu1  ;;  %v1018_v36 = vmul.f32 %v1786_v29, %v1786_v29 }
 0x16d   :  { %v825_v9 = vadd.f32 %v824_v40, %v784_v6 }
 0x16f   :  { %v1026_v41 = vmul.f32 %v825_v9, %v825_v9  ;;  %v716_v39 = vpop.f32.mrf.mxu0  ;;  %v1020_v9 = vmul.f32 %v1791_v62, %v1791_v62 }
 0x170   :  { %v758_v37 = vadd.f32 %v757_v7, %v716_v39 }
 0x171   :  { %v1042_v22 = vadd.f32 %v1026_v41, %v1010_v31 }
 0x172   :  { %v786_v32 = vpop.f32.mrf.mxu2 }
 0x173   :  { %v827_v26 = vpop.f32.mrf.mxu3  ;;  %v787_v52 = vadd.f32 %v786_v32, %v746_v60  ;;  %1108 = vmatmul.f32.gmra.mxu0 %v1042_v22  ;;  %v900_v15 = vpop.f32.mrf.mxu1 }
 0x175   :  { %v828_v38 = vadd.f32 %v827_v26, %v787_v52  ;;  %v1007_v26 = vmul.f32 %v1793_v4, %v1793_v4 }
 0x177   :  { %v1028_v27 = vmul.f32 %v828_v38, %v828_v38  ;;  %v859_v63 = vpop.f32.mrf.mxu0 }
 0x178   :  { %v901_v41 = vadd.f32 %v900_v15, %v859_v63  ;;  %v1013_v63 = vmul.f32 %v1809_v53, %v1809_v53 }
 0x179   :  { %v1044_v43 = vadd.f32 %v1028_v27, %v1012_v20 }
 0x17a   :  { %v789_v54 = vpop.f32.mrf.mxu2 }
 0x17b   :  { %v830_v45 = vpop.f32.mrf.mxu3  ;;  %v790_v42 = vadd.f32 %v789_v54, %v749_v28  ;;  %1111 = vmatmul.f32.gmra.mxu0 %v1044_v43  ;;  %v903_v5 = vpop.f32.mrf.mxu1  ;;  %v1009_v54 = vmul.f32 %v1797_v18, %v1797_v18 }
 0x17d   :  { %v831_v51 = vadd.f32 %v830_v45, %v790_v42 }
 0x17f   :  { %v1030_v46 = vmul.f32 %v831_v51, %v831_v51  ;;  %v862_v2 = vpop.f32.mrf.mxu0 }
 0x180   :  { %v904_v12 = vadd.f32 %v903_v5, %v862_v2 }
 0x181   :  { %v1046_v1 = vadd.f32 %v1030_v46, %v1014_v34 }
 0x182   :  { %v792_v47 = vpop.f32.mrf.mxu2 }
 0x183   :  { %v833_v56 = vpop.f32.mrf.mxu3  ;;  %v793_v58 = vadd.f32 %v792_v47, %v752_v35  ;;  %1114 = vmatmul.f32.gmra.mxu0 %v1046_v1  ;;  %v906_v19 = vpop.f32.mrf.mxu1  ;;  %v1011_v35 = vmul.f32 %v1803_v44, %v1803_v44 }
 0x185   :  { %v834_v14 = vadd.f32 %v833_v56, %v793_v58 }
 0x187   :  { %v1032_v49 = vmul.f32 %v834_v14, %v834_v14  ;;  %v865_v22 = vpop.f32.mrf.mxu0 }
 0x188   :  { %v907_v42 = vadd.f32 %v906_v19, %v865_v22 }
 0x189   :  { %v1048_v59 = vadd.f32 %v1032_v49, %v1016_v48 }
 0x18a   :  { %v795_v16 = vpop.f32.mrf.mxu2 }
 0x18b   :  { %v836_v30 = vpop.f32.mrf.mxu3  ;;  %v796_v17 = vadd.f32 %v795_v16, %v755_v24  ;;  %1117 = vmatmul.f32.gmra.mxu0 %v1048_v59  ;;  %v909_v43 = vpop.f32.mrf.mxu1 }
 0x18d   :  { %v837_v11 = vadd.f32 %v836_v30, %v796_v17 }
 0x18f   :  { %v1034_v10 = vmul.f32 %v837_v11, %v837_v11  ;;  %v868_v62 = vpop.f32.mrf.mxu0  ;;  %v1015_v11 = vmul.f32 %v1815_v0, %v1815_v0 }
 0x190   :  { %v910_v57 = vadd.f32 %v909_v43, %v868_v62 }
 0x191   :  { %v1050_v3 = vadd.f32 %v1034_v10, %v1018_v36 }
 0x192   :  { %v798_v40 = vpop.f32.mrf.mxu2 }
 0x193   :  { %v839_v6 = vpop.f32.mrf.mxu3  ;;  %v799_v8 = vadd.f32 %v798_v40, %v758_v37  ;;  %1120 = vmatmul.f32.gmra.mxu0 %v1050_v3  ;;  %v912_v46 = vpop.f32.mrf.mxu1 }
 0x195   :  { %v840_v33 = vadd.f32 %v839_v6, %v799_v8  ;;  %v1017_v8 = vmul.f32 %v1820_v13, %v1820_v13 }
 0x197   :  { %v1036_v31 = vmul.f32 %v840_v33, %v840_v33  ;;  %v871_v34 = vpop.f32.mrf.mxu0 }
 0x198   :  { %v913_v48 = vadd.f32 %v912_v46, %v871_v34 }
 0x199   :  { %v1052_v60 = vadd.f32 %v1036_v31, %v1020_v9 }
 0x19a   :  { %v941_v61 = vpop.f32.mrf.mxu2 }
 0x19b   :  { %v982_v29 = vpop.f32.mrf.mxu3  ;;  %v942_v23 = vadd.f32 %v941_v61, %v901_v41  ;;  %1123 = vmatmul.f32.gmra.mxu0 %v1052_v60  ;;  %v915_v24 = vpop.f32.mrf.mxu1 }
 0x19d   :  { %v983_v32 = vadd.f32 %v982_v29, %v942_v23  ;;  %v1019_v29 = vmul.f32 %v1824_v25, %v1824_v25 }
 0x19f   :  { %v1023_v52 = vmul.f32 %v983_v32, %v983_v32  ;;  %v874_v49 = vpop.f32.mrf.mxu0 }
 0x1a0   :  { %v916_v10 = vadd.f32 %v915_v24, %v874_v49 }
 0x1a1   :  { %v1039_v38 = vadd.f32 %v1023_v52, %v1007_v26 }
 0x1a2   :  { %v944_v20 = vpop.f32.mrf.mxu2 }
 0x1a3   :  { %v985_v27 = vpop.f32.mrf.mxu3  ;;  %v945_v28 = vadd.f32 %v944_v20, %v904_v12  ;;  %1143 = vmatmul.f32.vlgmr.msra.gmra.mxu1 %v1039_v38  ;;  %v918_v5 = vpop.f32.mrf.mxu1  ;;  %v1021_v20 = vmul.f32 %v1828_v55, %v1828_v55 }
 0x1a5   :  { %v986_v21 = vadd.f32 %v985_v27, %v945_v28 }
 0x1a7   :  { %v1025_v45 = vmul.f32 %v986_v21, %v986_v21  ;;  %v877_v2 = vpop.f32.mrf.mxu0 }
 0x1a8   :  { %v919_v9 = vadd.f32 %v918_v5, %v877_v2 }
 0x1a9   :  { %v1041_v39 = vadd.f32 %v1025_v45, %v1009_v54 }
 0x1aa   :  { %v947_v7 = vpop.f32.mrf.mxu2 }
 0x1ab   :  { %v988_v50 = vpop.f32.mrf.mxu3  ;;  %v948_v51 = vadd.f32 %v947_v7, %v907_v42  ;;  %1146 = vmatmul.f32.gmra.mxu1 %v1041_v39  ;;  %v921_v19 = vpop.f32.mrf.mxu1 }
 0x1ad   :  { %v989_v4 = vadd.f32 %v988_v50, %v948_v51 }
 0x1af   :  { %v1027_v1 = vmul.f32 %v989_v4, %v989_v4  ;;  %v880_v0 = vpop.f32.mrf.mxu0 }
 0x1b0   :  { %v922_v32 = vadd.f32 %v921_v19, %v880_v0 }
 0x1b1   :  { %v1043_v47 = vadd.f32 %v1027_v1, %v1011_v35  ;;  %v1200_v35 = vlaneseq }
 0x1b2   :  { %v950_v56 = vpop.f32.mrf.mxu2 }
 0x1b3   :  { %v991_v58 = vpop.f32.mrf.mxu3  ;;  %v951_v14 = vadd.f32 %v950_v56, %v910_v57  ;;  %1149 = vmatmul.f32.gmra.mxu1 %v1043_v47  ;;  %v1203_v47 = vshrl.u32 %v1200_v35, 7 }
 0x1b5   :  { %v992_v18 = vadd.f32 %v991_v58, %v951_v14 }
 0x1b7   :  { %v1029_v15 = vmul.f32 %v992_v18, %v992_v18 }
 0x1b9   :  { %v1045_v59 = vadd.f32 %v1029_v15, %v1013_v63  ;;  %v1207_v63 = vmul.u32 4, %v1203_v47 }
 0x1ba   :  { %v953_v16 = vpop.f32.mrf.mxu2 }
 0x1bb   :  { %v994_v30 = vpop.f32.mrf.mxu3  ;;  %v954_v17 = vadd.f32 %v953_v16, %v913_v48  ;;  %1152 = vmatmul.f32.gmra.mxu1 %v1045_v59  ;;  %v1862_v48 = vand.u32 127, %v1200_v35  ;;  %v1218_v49 = vadd.s32 1, %v1207_v63  ;;  %v1226_v59 = vadd.s32 2, %v1207_v63 }
 0x1bc   :  { %v1204_v16 = vadd.s32 8, %v1203_v47  ;;  %vm1212_vm7 = vcmp.lt.s32.totalorder %v1207_v63, 49 }
 0x1bd   :  { %v995_v44 = vadd.f32 %v994_v30, %v954_v17  ;;  %vm1205_vm6 = vcmp.lt.s32.totalorder %v1862_v48, 26  ;;  %vm1220_vm8 = vcmp.lt.s32.totalorder %v1218_v49, 49  ;;  %vm1228_vm10 = vcmp.lt.s32.totalorder %v1226_v59, 49 }
 0x1be   :  { %v1208_v2 = vmul.u32 4, %v1204_v16  ;;  %vm1222_vm11 = vmand %vm1205_vm6, %vm1220_vm8 }
 0x1bf   :  { %v1031_v36 = vmul.f32 %v995_v44, %v995_v44  ;;  %vm1214_vm12 = vmand %vm1205_vm6, %vm1212_vm7 }
 0x1c0   :  { %vm1230_vm13 = vmand %vm1205_vm6, %vm1228_vm10 }
 0x1c1   :  { %v1047_v37 = vadd.f32 %v1031_v36, %v1015_v11 }
 0x1c2   :  { %v956_v3 = vpop.f32.mrf.mxu2 }
 0x1c3   :  { %v997_v53 = vpop.f32.mrf.mxu3  ;;  %v957_v40 = vadd.f32 %v956_v3, %v916_v10  ;;  %1155 = vmatmul.f32.gmra.mxu1 %v1047_v37 }
 0x1c5   :  { %v998_v6 = vadd.f32 %v997_v53, %v957_v40  ;;  %v1234_v53 = vadd.s32 3, %v1207_v63 }
 0x1c7   :  { %v1033_v33 = vmul.f32 %v998_v6, %v998_v6  ;;  %vm1236_vm14 = vcmp.lt.s32.totalorder %v1234_v53, 49 }
 0x1c9   :  { %v1049_v31 = vadd.f32 %v1033_v33, %v1017_v8  ;;  %v1219_v8 = vadd.s32 1, %v1208_v2  ;;  %v1227_v33 = vadd.s32 2, %v1208_v2 }
 0x1ca   :  { %v959_v41 = vpop.f32.mrf.mxu2 }
 0x1cb   :  { %v1000_v60 = vpop.f32.mrf.mxu3  ;;  %v960_v22 = vadd.f32 %v959_v41, %v919_v9  ;;  %1158 = vmatmul.f32.gmra.mxu1 %v1049_v31  ;;  %vm1221_vm15 = vcmp.lt.s32.totalorder %v1219_v8, 49 }
 0x1cd   :  { %v1001_v61 = vadd.f32 %v1000_v60, %v960_v22 }
 0x1cf   :  { %v1035_v23 = vmul.f32 %v1001_v61, %v1001_v61 }
 0x1d1   :  { %v1051_v26 = vadd.f32 %v1035_v23, %v1019_v29 }
 0x1d2   :  { %v962_v52 = vpop.f32.mrf.mxu2 }
 0x1d3   :  { %v1003_v12 = vpop.f32.mrf.mxu3  ;;  %v963_v38 = vadd.f32 %v962_v52, %v922_v32  ;;  %1161 = vmatmul.f32.gmra.mxu1 %v1051_v26 }
 0x1d5   :  { %v1004_v13 = vadd.f32 %v1003_v12, %v963_v38  ;;  %v1235_v38 = vadd.s32 3, %v1208_v2 }
 0x1d7   :  { %v1037_v27 = vmul.f32 %v1004_v13, %v1004_v13  ;;  %vm1237_vm8 = vcmp.lt.s32.totalorder %v1235_v38, 49 }
 0x1d9   :  { %v1053_v28 = vadd.f32 %v1037_v27, %v1021_v20 }
 0x1db   :  { %1164 = vmatmul.f32.gmra.mxu1 %v1053_v28 }
 0x1e0   :  { %v1103_v62 = vpop.f32.mrf.mxu0 }
 0x1e8   :  { %v1106_v43 = vpop.f32.mrf.mxu0 }
 0x1f0   :  { %v1109_v54 = vpop.f32.mrf.mxu0 }
 0x1f8   :  { %v1112_v25 = vpop.f32.mrf.mxu0 }
 0x200   :  { %v1115_v7 = vpop.f32.mrf.mxu0 }
 0x208   :  { %v1118_v46 = vpop.f32.mrf.mxu0 }
 0x210   :  { %v1121_v15 = vpop.f32.mrf.mxu0 }
 0x218   :  { %v1124_v31 = vpop.f32.mrf.mxu0 }
 0x220   :  { %v1144_v21 = vpop.f32.mrf.mxu1 }
 0x221   :  { %v1145_v4 = vadd.f32 %v1144_v21, %v1103_v62 }
 0x223   :  { %vm1168_vm1 = vcmp.le.f32.partialorder %v1145_v4, 0.0 }
 0x224   :  { %v1176_v56 = vsel %vm1168_vm1, 2.220446e-16, %v1145_v4  ;;  %vm1238_vm1 = vmand %vm1205_vm6, %vm1236_vm14 }
 0x228   :  { %v1147_v45 = vpop.f32.mrf.mxu1 }
 0x229   :  { %v1148_v55 = vadd.f32 %v1147_v45, %v1106_v43 }
 0x22b   :  { %vm1169_vm3 = vcmp.le.f32.partialorder %v1148_v55, 0.0 }
 0x22c   :  { %v1177_v24 = vsel %vm1169_vm3, 2.220446e-16, %v1148_v55  ;;  %vm1229_vm3 = vcmp.lt.s32.totalorder %v1227_v33, 49 }
 0x22d   :  { %vm1231_vm7 = vmand %vm1205_vm6, %vm1229_vm3 }
 0x230   :  { %v1150_v42 = vpop.f32.mrf.mxu1 }
 0x231   :  { %v1151_v51 = vadd.f32 %v1150_v42, %v1109_v54 }
 0x233   :  { %vm1170_vm0 = vcmp.le.f32.partialorder %v1151_v51, 0.0 }
 0x234   :  { %v1178_v1 = vsel %vm1170_vm0, 2.220446e-16, %v1151_v51 }
 0x235   :  { %1402 = vlog2.f32 %v1178_v1 }
 0x236   :  { %1404 = vlog2.f32 %v1176_v56 }
 0x238   :  { %v1153_v39 = vpop.f32.mrf.mxu1 }
 0x239   :  { %v1154_v58 = vadd.f32 %v1153_v39, %v1112_v25 }
 0x23b   :  { %vm1171_vm4 = vcmp.le.f32.partialorder %v1154_v58, 0.0  ;;  %v1403_v44 = vpop.eup %1402 }
 0x23c   :  { %v1179_v30 = vsel %vm1171_vm4, 2.220446e-16, %v1154_v58  ;;  %v1405_v10 = vpop.eup %1404  ;;  %v1189_v5 = vmul.f32 0.6931472, %v1403_v44  ;;  %vm1223_vm4 = vmand %vm1205_vm6, %vm1221_vm15 }
 0x23d   :  { %v1185_v40 = vmul.f32 0.6931472, %v1405_v10 }
 0x23e   :  { %v1224_v60 = vsel %vm1222_vm11, %v1189_v5, 0.0 }
 0x23f   :  { %v1216_v61 = vsel %vm1214_vm12, %v1185_v40, 0.0 }
 0x240   :  { %v1156_v50 = vpop.f32.mrf.mxu1  ;;  %v1242_v32 = vadd.f32 %v1224_v60, %v1216_v61 }
 0x241   :  { %v1157_v34 = vadd.f32 %v1156_v50, %v1115_v7 }
 0x243   :  { %vm1172_vm2 = vcmp.le.f32.partialorder %v1157_v34, 0.0 }
 0x244   :  { %v1180_v14 = vsel %vm1172_vm2, 2.220446e-16, %v1157_v34  ;;  %vm1213_vm2 = vcmp.lt.s32.totalorder %v1208_v2, 49 }
 0x245   :  { %1406 = vlog2.f32 %v1180_v14 }
 0x246   :  { %1408 = vlog2.f32 %v1177_v24 }
 0x247   :  { %1410 = vlog2.f32 %v1179_v30 }
 0x248   :  { %v1159_v57 = vpop.f32.mrf.mxu1 }
 0x249   :  { %v1160_v18 = vadd.f32 %v1159_v57, %v1118_v46 }
 0x24b   :  { %vm1173_vm5 = vcmp.le.f32.partialorder %v1160_v18, 0.0  ;;  %v1407_v37 = vpop.eup %1406 }
 0x24c   :  { %v1181_v11 = vsel %vm1173_vm5, 2.220446e-16, %v1160_v18  ;;  %v1193_v6 = vmul.f32 0.6931472, %v1407_v37  ;;  %v1409_v9 = vpop.eup %1408  ;;  %vm1215_vm5 = vmand %vm1205_vm6, %vm1213_vm2 }
 0x24d   :  { %1412 = vlog2.f32 %v1181_v11  ;;  %v1411_v22 = vpop.eup %1410  ;;  %v1187_v20 = vmul.f32 0.6931472, %v1409_v9 }
 0x24e   :  { %v1232_v29 = vsel %vm1230_vm13, %v1193_v6, 0.0  ;;  %v1191_v26 = vmul.f32 0.6931472, %v1411_v22 }
 0x24f   :  { %v1244_v13 = vadd.f32 %v1242_v32, %v1232_v29  ;;  %v1217_v21 = vsel %vm1215_vm5, %v1187_v20, 0.0 }
 0x250   :  { %v1162_v17 = vpop.f32.mrf.mxu1  ;;  %v1225_v43 = vsel %vm1223_vm4, %v1191_v26, 0.0 }
 0x251   :  { %v1163_v36 = vadd.f32 %v1162_v17, %v1121_v15  ;;  %v1243_v25 = vadd.f32 %v1225_v43, %v1217_v21 }
 0x253   :  { %vm1174_vm9 = vcmp.le.f32.partialorder %v1163_v36, 0.0  ;;  %v1413_v19 = vpop.eup %1412 }
 0x254   :  { %v1182_v3 = vsel %vm1174_vm9, 2.220446e-16, %v1163_v36  ;;  %v1195_v27 = vmul.f32 0.6931472, %v1413_v19  ;;  %vm1239_vm9 = vmand %vm1205_vm6, %vm1237_vm8 }
 0x255   :  { %1414 = vlog2.f32 %v1182_v3 }
 0x256   :  { %v1233_v54 = vsel %vm1231_vm7, %v1195_v27, 0.0 }
 0x257   :  { %v1245_v39 = vadd.f32 %v1243_v25, %v1233_v54 }
 0x258   :  { %v1165_v41 = vpop.f32.mrf.mxu1 }
 0x259   :  { %v1166_v0 = vadd.f32 %v1165_v41, %v1124_v31 }
 0x25b   :  { %v1415_v23 = vpop.eup %1414  ;;  %vm1175_vm0 = vcmp.le.f32.partialorder %v1166_v0, 0.0 }
 0x25c   :  { %v1183_v52 = vsel %vm1175_vm0, 2.220446e-16, %v1166_v0  ;;  %v1197_v12 = vmul.f32 0.6931472, %v1415_v23 }
 0x25d   :  { %1416 = vlog2.f32 %v1183_v52 }
 0x25e   :  { %v1240_v28 = vsel %vm1238_vm1, %v1197_v12, 0.0 }
 0x25f   :  { %v1246_v62 = vadd.f32 %v1244_v13, %v1240_v28 }
 0x261   :  { %1248 = vadd.xlane.f32.xlu0 %v1246_v62 }
 0x263   :  { %v1417_v45 = vpop.eup %1416 }
 0x264   :  { %v1199_v42 = vmul.f32 0.6931472, %v1417_v45 }
 0x266   :  { %v1241_v7 = vsel %vm1239_vm9, %v1199_v42, 0.0 }
 0x267   :  { %v1247_v50 = vadd.f32 %v1245_v39, %v1241_v7 }
 0x269   :  { %1250 = vadd.xlane.f32.xlu0 %v1247_v50 }
 0x2d4   :  { %v1249_v51 = vpop.xlane.xlu0 %1248 }
 0x2d5   :  { %v1252_v4 = vmul.f32 0.009615385, %v1249_v51 }
 0x2d7   :  { %v1266_v34 = vsub.f32 %v1224_v60, %v1252_v4  ;;  %v1254_v46 = vsub.f32 %v1216_v61, %v1252_v4  ;;  %v1278_v35 = vsub.f32 %v1232_v29, %v1252_v4  ;;  %v1290_v11 = vsub.f32 %v1240_v28, %v1252_v4 }
 0x2d9   :  { %v1884_v55 = vsel %vm1205_vm6, %v1266_v34, 0.0  ;;  %v1888_v1 = vsel %vm1205_vm6, %v1254_v46, 0.0  ;;  %v1892_v57 = vsel %vm1205_vm6, %v1278_v35, 0.0  ;;  %v1292_v10 = vsel %vm1205_vm6, %v1290_v11, 0.0 }
 0x2da   :  { %v1270_v47 = vmul.f32 %v1884_v55, %v1884_v55  ;;  %v1258_v56 = vmul.f32 %v1888_v1, %v1888_v1  ;;  %v1282_v58 = vmul.f32 %v1892_v57, %v1892_v57  ;;  %v1294_v2 = vmul.f32 %v1292_v10, %v1292_v10 }
 0x2dc   :  { %1272 = vadd.xlane.f32.xlu2 %v1270_v47  ;;  %1260 = vadd.xlane.f32.xlu1 %v1258_v56  ;;  %v1251_v14 = vpop.xlane.xlu0 %1250 }
 0x2dd   :  { %1284 = vadd.xlane.f32.xlu0 %v1282_v58  ;;  %v1253_v18 = vmul.f32 0.009615385, %v1251_v14 }
 0x2df   :  { %v1291_v63 = vsub.f32 %v1241_v7, %v1253_v18  ;;  %v1267_v15 = vsub.f32 %v1225_v43, %v1253_v18  ;;  %v1255_v49 = vsub.f32 %v1217_v21, %v1253_v18  ;;  %v1279_v36 = vsub.f32 %v1233_v54, %v1253_v18 }
 0x2e1   :  { %v1902_v24 = vsel %vm1205_vm6, %v1291_v63, 0.0  ;;  %v1906_v59 = vsel %vm1205_vm6, %v1267_v15, 0.0  ;;  %v1257_v16 = vsel %vm1205_vm6, %v1255_v49, 0.0  ;;  %v1281_v37 = vsel %vm1205_vm6, %v1279_v36, 0.0 }
 0x2e2   :  { %v1295_v30 = vmul.f32 %v1902_v24, %v1902_v24  ;;  %v1271_v17 = vmul.f32 %v1906_v59, %v1906_v59  ;;  %v1259_v44 = vmul.f32 %v1257_v16, %v1257_v16  ;;  %v1283_v5 = vmul.f32 %v1281_v37, %v1281_v37 }
 0x2e4   :  { %1274 = vadd.xlane.f32.xlu2 %v1271_v17  ;;  %1262 = vadd.xlane.f32.xlu1 %v1259_v44 }
 0x2e5   :  { %1298 = vadd.xlane.f32.xlu0 %v1295_v30 }
 0x2ec   :  { %1296 = vadd.xlane.f32.xlu2 %v1294_v2  ;;  %1286 = vadd.xlane.f32.xlu1 %v1283_v5 }
 0x34f   :  { %v1273_v3 = vpop.xlane.xlu2 %1272  ;;  %v1261_v53 = vpop.xlane.xlu1 %1260 }
 0x350   :  { %v1285_v40 = vpop.xlane.xlu0 %1284  ;;  %v1276_v33 = vadd.f32 %v1273_v3, %v1261_v53 }
 0x352   :  { %v1288_v9 = vadd.f32 %v1285_v40, %v1276_v33 }
 0x357   :  { %v1275_v6 = vpop.xlane.xlu2 %1274  ;;  %v1263_v8 = vpop.xlane.xlu1 %1262 }
 0x358   :  { %v1277_v31 = vadd.f32 %v1275_v6, %v1263_v8  ;;  %v1299_v19 = vpop.xlane.xlu0 %1298 }
 0x35f   :  { %v1297_v41 = vpop.xlane.xlu2 %1296  ;;  %v1287_v60 = vpop.xlane.xlu1 %1286 }
 0x360   :  { %v1300_v22 = vadd.f32 %v1297_v41, %v1288_v9  ;;  %v1289_v0 = vadd.f32 %v1287_v60, %v1277_v31 }
 0x362   :  { %v1302_v61 = vmul.f32 0.009615385, %v1300_v22  ;;  %v1301_v48 = vadd.f32 %v1299_v19, %v1289_v0 }
 0x364   :  { %v1304_v29 = vadd.f32 1e-05, %v1302_v61  ;;  %v1303_v23 = vmul.f32 0.009615385, %v1301_v48 }
 0x366   :  { %1418 = vrsqrt.f32 %v1304_v29  ;;  %v1305_v32 = vadd.f32 1e-05, %v1303_v23  ;;  %vm1312_vm10 = vweird.f32 %v1304_v29 }
 0x368   :  { %1420 = vrsqrt.f32 %v1305_v32  ;;  %vm1322_vm13 = vweird.f32 %v1305_v32 }
 0x36c   :  { %v1419_v26 = vpop.eup %1418 }
 0x36d   :  { %v1307_v52 = vmul.f32 %v1419_v26, %v1304_v29  ;;  %vm1313_vm6 = vweird.f32 %v1419_v26 }
 0x36e   :  { %v1421_v12 = vpop.eup %1420  ;;  %vm1314_vm12 = vmor %vm1312_vm10, %vm1313_vm6 }
 0x36f   :  { %v1308_v38 = vmul.f32 %v1419_v26, %v1307_v52  ;;  %v1317_v13 = vmul.f32 %v1421_v12, %v1305_v32  ;;  %vm1323_vm11 = vweird.f32 %v1421_v12 }
 0x370   :  { %vm1324_vm14 = vmor %vm1322_vm13, %vm1323_vm11 }
 0x371   :  { %v1309_v20 = vmul.f32 0.5, %v1308_v38  ;;  %v1318_v27 = vmul.f32 %v1421_v12, %v1317_v13 }
 0x373   :  { %v1310_v28 = vsub.f32 1.5, %v1309_v20  ;;  %v1319_v62 = vmul.f32 0.5, %v1318_v27 }
 0x375   :  { %v1311_v43 = vmul.f32 %v1419_v26, %v1310_v28  ;;  %v1320_v21 = vsub.f32 1.5, %v1319_v62 }
 0x377   :  { %v1315_v54 = vsel %vm1314_vm12, %v1419_v26, %v1311_v43  ;;  %v1321_v45 = vmul.f32 %v1421_v12, %v1320_v21 }
 0x378   :  { %v1326_v25 = vmul.f32 %v1315_v54, %v1888_v1  ;;  %v1328_v42 = vmul.f32 %v1315_v54, %v1884_v55  ;;  %v1330_v39 = vmul.f32 %v1315_v54, %v1892_v57  ;;  %v1332_v7 = vmul.f32 %v1315_v54, %v1292_v10 }
 0x379   :  { %v1325_v50 = vsel %vm1324_vm14, %v1421_v12, %v1321_v45 }
 0x37a   :  { %1334 = vst [vmem:[#allocation8] sm:$0xff] %v1326_v25  ;;  %v1327_v51 = vmul.f32 %v1325_v50, %v1257_v16  ;;  %v1329_v4 = vmul.f32 %v1325_v50, %v1906_v59  ;;  %v1331_v34 = vmul.f32 %v1325_v50, %v1281_v37  ;;  %v1333_v46 = vmul.f32 %v1325_v50, %v1902_v24 }
 0x37b   :  { %1335 = vst [vmem:[#allocation8 + $0x8] sm:$0xff] %v1328_v42 }
 0x37c   :  { %1336 = vst [vmem:[#allocation8 + $0x10] sm:$0xff] %v1330_v39 }
 0x37d   :  { %1337 = vst [vmem:[#allocation8 + $0x18] sm:$0xff] %v1332_v7 }
 0x37e   :  { %1338 = vst [vmem:[#allocation8 + $0x20] sm:$0xff] %v1327_v51 }
 0x37f   :  { %1339 = vst [vmem:[#allocation8 + $0x28] sm:$0xff] %v1329_v4 }
 0x380   :  { %1340 = vst [vmem:[#allocation8 + $0x30] sm:$0xff] %v1331_v34 }
 0x381   :  { %1341 = vst [vmem:[#allocation8 + $0x38] sm:$0xff] %v1333_v46 }
 0x382   :  { %1354 = dma.vmem_to_hbm [thread:$0]  %s1347_s29, 1024, %s1349_s5, [#allocation4], %s1547_s20, %s1547_s20, %s1548_s21  }
 0x383   :  { %1544 = dma.done.wait [#allocation4], 1024  }
 0x384   :  { %1545 = vsyncadd [#allocation4], 4294966272 }
 0x385   :  { %1359 = vsyncpa [#allocation3], 1 }
 0x386   :  { %1360 = vsyncpa [#allocation6], 1 }
 0x387   :  { %1361 = vsyncpa [#allocation4], 1 }

</bundles_post_ra>
